<compile_context>
chip_gen: v7x
topology: tpu7x:2x2x1
jax: 0.10.0
libtpu: 0.0.40
codegen_flags: <defaults>
</compile_context>

<pallas_src>
import functools
import math

import jax
import jax.numpy as jnp
from jax.experimental import pallas as pl
from jax.experimental.pallas import tpu as pltpu


def _layer_norm_f32(v, w, b, eps=1e-5):
    mu = jnp.mean(v, axis=-1, keepdims=True)
    var = jnp.mean((v - mu) ** 2, axis=-1, keepdims=True)
    return (v - mu) * jax.lax.rsqrt(var + eps) * w + b


def _residual_attn_kernel(x_ref, ln1_w_ref, ln1_b_ref, wqkv_ref, bqkv_ref,
                          wo_ref, bo_ref, ln2_w_ref, ln2_b_ref,
                          wfc_ref, bfc_ref, wproj_ref, bproj_ref,
                          out_ref, ctx_scratch,
                          *, d_model, n_head, block_batch, seq_len):
    D = d_model
    hd = D // n_head
    scale = 1.0 / math.sqrt(hd)
    rows = block_batch * seq_len
    mxu_dtype = wqkv_ref.dtype                      # bf16 compute dtype

    x = x_ref[...].astype(jnp.float32)              # (Bt, L, D)
    xf = x.reshape(rows, D)                         # (Bt*L, D)

    # ---------------- attention branch ----------------
    h1 = _layer_norm_f32(xf, ln1_w_ref[...], ln1_b_ref[...])
    qkv = jnp.dot(h1.astype(mxu_dtype), wqkv_ref[...],
                  preferred_element_type=jnp.float32) + bqkv_ref[...]   # (rows, 3D)
    q = qkv[:, 0 * D:1 * D].reshape(block_batch, seq_len, D)
    k = qkv[:, 1 * D:2 * D].reshape(block_batch, seq_len, D)
    v = qkv[:, 2 * D:3 * D].reshape(block_batch, seq_len, D)

    # Static head loop; each head writes its context into a scratch slice
    # (no concatenate / lane relayout).  Scores/softmax in f32, MXU ops in bf16.
    for h in range(n_head):
        sl = slice(h * hd, (h + 1) * hd)
        qh = q[..., sl].astype(mxu_dtype)           # (Bt, L, hd)
        kh = k[..., sl].astype(mxu_dtype)
        vh = v[..., sl].astype(mxu_dtype)
        s = jnp.einsum("bld,bmd->blm", qh, kh,
                       preferred_element_type=jnp.float32) * scale      # (Bt, L, L)
        s = s - jnp.max(s, axis=-1, keepdims=True)
        p = jnp.exp(s)
        p = p * pl.reciprocal(jnp.sum(p, axis=-1, keepdims=True), approx=True)
        ctx_scratch[:, :, sl] = jnp.einsum(
            "blm,bmd->bld", p.astype(mxu_dtype), vh,
            preferred_element_type=jnp.float32)

    ctx = ctx_scratch[...].reshape(rows, D)
    attn_out = jnp.dot(ctx.astype(mxu_dtype), wo_ref[...],
                       preferred_element_type=jnp.float32) + bo_ref[...]
    x1 = xf + attn_out

    # ---------------- MLP branch ----------------
    h2 = _layer_norm_f32(x1, ln2_w_ref[...], ln2_b_ref[...])
    hf = jnp.dot(h2.astype(mxu_dtype), wfc_ref[...],
                 preferred_element_type=jnp.float32) + bfc_ref[...]     # (rows, 4D)
    hf = hf * jax.nn.sigmoid(1.702 * hf)            # QuickGELU, f32
    mlp_out = jnp.dot(hf.astype(mxu_dtype), wproj_ref[...],
                      preferred_element_type=jnp.float32) + bproj_ref[...]

    out_ref[...] = (x1 + mlp_out).reshape(block_batch, seq_len, D).astype(out_ref.dtype)


def _pick_block_batch(n, seq_len, target_rows=512):
    """Largest divisor of n with bt*L <= target_rows, preferring >=2 grid steps
    so the parallel batch axis can shard across TensorCores (v7x megacore)."""
    best = 1
    for bt in range(1, n + 1):
        if n % bt == 0 and bt * seq_len <= target_rows:
            best = bt
    if n // best < 2:
        for bt in range(best - 1, 0, -1):
            if n % bt == 0 and n // bt >= 2:
                return bt
    return best


def prepare_params(params, compute_dtype=jnp.bfloat16):
    """One-time conversion of PyTorch-layout weights to kernel layout:
    linear weights pre-transposed (no in-kernel `.T`) and cast to the bf16 MXU
    compute dtype; biases / LayerNorm params stay f32."""
    f32 = jnp.float32
    return {
        "ln1_w": params["ln1_w"].astype(f32),
        "ln1_b": params["ln1_b"].astype(f32),
        "wqkv_t": params["wqkv"].T.astype(compute_dtype),    # (D, 3D)
        "bqkv": params["bqkv"].astype(f32),
        "wo_t": params["wo"].T.astype(compute_dtype),        # (D, D)
        "bo": params["bo"].astype(f32),
        "ln2_w": params["ln2_w"].astype(f32),
        "ln2_b": params["ln2_b"].astype(f32),
        "wfc_t": params["wfc"].T.astype(compute_dtype),      # (D, 4D)
        "bfc": params["bfc"].astype(f32),
        "wproj_t": params["wproj"].T.astype(compute_dtype),  # (4D, D)
        "bproj": params["bproj"].astype(f32),
    }


def residual_attention_block_nld(x_nld, prepared, *, d_model, n_head,
                                 block_batch=None):
    """Forward on (N, L, D) activations (preferred layout for stacked blocks)."""
    N, L, D = x_nld.shape
    assert D == d_model and D % n_head == 0
    d4 = 4 * D

    if block_batch is None:
        block_batch = _pick_block_batch(N, L)
    assert N % block_batch == 0
    grid = (N // block_batch,)

    def const_spec(shape):
        return pl.BlockSpec(shape, lambda g: (0,) * len(shape))

    kernel = functools.partial(_residual_attn_kernel, d_model=D, n_head=n_head,
                               block_batch=block_batch, seq_len=L)

    return pl.pallas_call(
        kernel,
        out_shape=jax.ShapeDtypeStruct((N, L, D), x_nld.dtype),
        grid_spec=pltpu.PrefetchScalarGridSpec(
            num_scalar_prefetch=0,
            grid=grid,
            in_specs=[
                pl.BlockSpec((block_batch, L, D), lambda g: (g, 0, 0)),  # x block
                const_spec((1, D)),        # ln_1.weight
                const_spec((1, D)),        # ln_1.bias
                const_spec((D, 3 * D)),    # attn.in_proj_weight^T  (bf16)
                const_spec((1, 3 * D)),    # attn.in_proj_bias
                const_spec((D, D)),        # attn.out_proj.weight^T (bf16)
                const_spec((1, D)),        # attn.out_proj.bias
                const_spec((1, D)),        # ln_2.weight
                const_spec((1, D)),        # ln_2.bias
                const_spec((D, d4)),       # mlp.c_fc.weight^T      (bf16)
                const_spec((1, d4)),       # mlp.c_fc.bias
                const_spec((d4, D)),       # mlp.c_proj.weight^T    (bf16)
                const_spec((1, D)),        # mlp.c_proj.bias
            ],
            out_specs=pl.BlockSpec((block_batch, L, D), lambda g: (g, 0, 0)),
            scratch_shapes=[pltpu.VMEM((block_batch, L, D), jnp.float32)],
        ),
        compiler_params=pltpu.CompilerParams(
            dimension_semantics=("parallel",),
            vmem_limit_bytes=64 * 1024 * 1024,   # resident bf16 weights + act tiles
        ),
    )(x_nld,
      prepared["ln1_w"], prepared["ln1_b"],
      prepared["wqkv_t"], prepared["bqkv"],
      prepared["wo_t"], prepared["bo"],
      prepared["ln2_w"], prepared["ln2_b"],
      prepared["wfc_t"], prepared["bfc"],
      prepared["wproj_t"], prepared["bproj"])


def residual_attention_block(x_lnd, prepared, *, d_model, n_head,
                             block_batch=None):
    """PyTorch nn.MultiheadAttention layout entry point: x is (L, N, D).
    For a stack of blocks, use residual_attention_block_nld and keep
    activations in (N, L, D) so the transpose is paid once per model."""
    x_nld = jnp.transpose(x_lnd, (1, 0, 2))
    out_nld = residual_attention_block_nld(x_nld, prepared, d_model=d_model,
                                           n_head=n_head,
                                           block_batch=block_batch)
    return jnp.transpose(out_nld, (1, 0, 2))


def reference_block(x, params, *, d_model, n_head):
    """Pure-JAX f32 reference of the PyTorch forward (layout (L, N, D))."""
    L, N, D = x.shape
    hd = D // n_head
    scale = 1.0 / math.sqrt(hd)

    def layer_norm(v, w, b):
        mu = jnp.mean(v, axis=-1, keepdims=True)
        var = jnp.mean((v - mu) ** 2, axis=-1, keepdims=True)
        return (v - mu) * jax.lax.rsqrt(var + 1e-5) * w + b

    h1 = layer_norm(x, params["ln1_w"][0], params["ln1_b"][0])
    qkv = jnp.einsum("lnd,ed->lne", h1, params["wqkv"]) + params["bqkv"][0]
    q, k, v = jnp.split(qkv, 3, axis=-1)

    def to_heads(t):
        return jnp.transpose(t.reshape(L, N, n_head, hd), (1, 2, 0, 3))

    qh, kh, vh = to_heads(q) * scale, to_heads(k), to_heads(v)
    s = jnp.einsum("nhld,nhmd->nhlm", qh, kh)
    p = jax.nn.softmax(s, axis=-1)
    ctx = jnp.einsum("nhlm,nhmd->nhld", p, vh)
    ctx = jnp.transpose(ctx, (2, 0, 1, 3)).reshape(L, N, D)
    attn_out = jnp.einsum("lnd,ed->lne", ctx, params["wo"]) + params["bo"][0]
    x1 = x + attn_out

    h2 = layer_norm(x1, params["ln2_w"][0], params["ln2_b"][0])
    hf = jnp.einsum("lnd,ed->lne", h2, params["wfc"]) + params["bfc"][0]
    hf = hf * jax.nn.sigmoid(1.702 * hf)
    mlp_out = jnp.einsum("lne,de->lnd", hf, params["wproj"]) + params["bproj"][0]
    return x1 + mlp_out


def make_params(key, d_model):
    d4 = 4 * d_model
    ks = jax.random.split(key, 8)
    s = 0.02
    return {
        "ln1_w": jnp.ones((1, d_model), jnp.float32),
        "ln1_b": jnp.zeros((1, d_model), jnp.float32),
        "wqkv": s * jax.random.normal(ks[0], (3 * d_model, d_model), jnp.float32),
        "bqkv": s * jax.random.normal(ks[1], (1, 3 * d_model), jnp.float32),
        "wo": s * jax.random.normal(ks[2], (d_model, d_model), jnp.float32),
        "bo": s * jax.random.normal(ks[3], (1, d_model), jnp.float32),
        "ln2_w": jnp.ones((1, d_model), jnp.float32),
        "ln2_b": jnp.zeros((1, d_model), jnp.float32),
        "wfc": s * jax.random.normal(ks[4], (d4, d_model), jnp.float32),
        "bfc": s * jax.random.normal(ks[5], (1, d4), jnp.float32),
        "wproj": s * jax.random.normal(ks[6], (d_model, d4), jnp.float32),
        "bproj": s * jax.random.normal(ks[7], (1, d_model), jnp.float32),
    }


if __name__ == "__main__":
    L, N, D, H = 8, 2, 32, 4   # seq, batch, d_model, n_head (small self-test)
    key = jax.random.PRNGKey(0)
    kx, kp = jax.random.split(key)
    x = jax.random.normal(kx, (L, N, D), jnp.float32)

    params = make_params(kp, D)              # PyTorch-layout weights
    prepared = prepare_params(params)        # pre-transposed bf16 kernel weights

    out = residual_attention_block(x, prepared, d_model=D, n_head=H)
    out = jax.block_until_ready(out)

    ref = reference_block(x, params, d_model=D, n_head=H)
    assert out.shape == (L, N, D)
    max_err = float(jnp.max(jnp.abs(out - ref)))
    assert jnp.allclose(out, ref, atol=2e-2, rtol=2e-2), (
        f"mismatch vs reference (max abs err {max_err})")

    print("KERNEL_OK")
</pallas_src>

<mosaic_0001>
module attributes {stable_mosaic.version = 11 : i64} {
  func.func @_residual_attn_kernel(%arg0: i32, %arg1: memref<1x8x32xf32, #tpu.memory_space<vmem>>, %arg2: memref<1x32xf32, #tpu.memory_space<vmem>>, %arg3: memref<1x32xf32, #tpu.memory_space<vmem>>, %arg4: memref<32x96xbf16, #tpu.memory_space<vmem>>, %arg5: memref<1x96xf32, #tpu.memory_space<vmem>>, %arg6: memref<32x32xbf16, #tpu.memory_space<vmem>>, %arg7: memref<1x32xf32, #tpu.memory_space<vmem>>, %arg8: memref<1x32xf32, #tpu.memory_space<vmem>>, %arg9: memref<1x32xf32, #tpu.memory_space<vmem>>, %arg10: memref<32x128xbf16, #tpu.memory_space<vmem>>, %arg11: memref<1x128xf32, #tpu.memory_space<vmem>>, %arg12: memref<128x32xbf16, #tpu.memory_space<vmem>>, %arg13: memref<1x32xf32, #tpu.memory_space<vmem>>, %arg14: memref<1x8x32xf32, #tpu.memory_space<vmem>>, %arg15: memref<1x8x32xf32, #tpu.memory_space<vmem>>) attributes {dimension_semantics = [#tpu.dimension_semantics<parallel>], iteration_bounds = array<i64: 2>, scalar_prefetch = 0 : i64, scratch_operands = 1 : i64, tpu.core_type = #tpu.core_type<tc>, window_params = [{transform_indices = @transform_0, window_bounds = array<i64: 1, 8, 32>}, {pipeline_mode = #tpu.pipeline_mode<synchronous>, transform_indices = @transform_1, window_bounds = array<i64: 1, 32>}, {pipeline_mode = #tpu.pipeline_mode<synchronous>, transform_indices = @transform_2, window_bounds = array<i64: 1, 32>}, {pipeline_mode = #tpu.pipeline_mode<synchronous>, transform_indices = @transform_3, window_bounds = array<i64: 32, 96>}, {pipeline_mode = #tpu.pipeline_mode<synchronous>, transform_indices = @transform_4, window_bounds = array<i64: 1, 96>}, {pipeline_mode = #tpu.pipeline_mode<synchronous>, transform_indices = @transform_5, window_bounds = array<i64: 32, 32>}, {pipeline_mode = #tpu.pipeline_mode<synchronous>, transform_indices = @transform_6, window_bounds = array<i64: 1, 32>}, {pipeline_mode = #tpu.pipeline_mode<synchronous>, transform_indices = @transform_7, window_bounds = array<i64: 1, 32>}, {pipeline_mode = #tpu.pipeline_mode<synchronous>, transform_indices = @transform_8, window_bounds = array<i64: 1, 32>}, {pipeline_mode = #tpu.pipeline_mode<synchronous>, transform_indices = @transform_9, window_bounds = array<i64: 32, 128>}, {pipeline_mode = #tpu.pipeline_mode<synchronous>, transform_indices = @transform_10, window_bounds = array<i64: 1, 128>}, {pipeline_mode = #tpu.pipeline_mode<synchronous>, transform_indices = @transform_11, window_bounds = array<i64: 128, 32>}, {pipeline_mode = #tpu.pipeline_mode<synchronous>, transform_indices = @transform_12, window_bounds = array<i64: 1, 32>}, {transform_indices = @transform_13, window_bounds = array<i64: 1, 8, 32>}]} {
    %c0 = arith.constant 0 : index
    %c0_0 = arith.constant 0 : index
    %c0_1 = arith.constant 0 : index
    %0 = vector.load %arg1[%c0, %c0_0, %c0_1] : memref<1x8x32xf32, #tpu.memory_space<vmem>>, vector<1x8x32xf32>
    %1 = vector.shape_cast %0 : vector<1x8x32xf32> to vector<8x32xf32>
    %c0_2 = arith.constant 0 : index
    %c0_3 = arith.constant 0 : index
    %2 = vector.load %arg2[%c0_2, %c0_3] : memref<1x32xf32, #tpu.memory_space<vmem>>, vector<1x32xf32>
    %c0_4 = arith.constant 0 : index
    %c0_5 = arith.constant 0 : index
    %3 = vector.load %arg3[%c0_4, %c0_5] : memref<1x32xf32, #tpu.memory_space<vmem>>, vector<1x32xf32>
    %cst = arith.constant dense<0.000000e+00> : vector<8xf32>
    %4 = vector.multi_reduction <add>, %1, %cst [1] : vector<8x32xf32> to vector<8xf32>
    %5 = vector.shape_cast %4 : vector<8xf32> to vector<8x1xf32>
    %cst_6 = arith.constant 3.200000e+01 : f32
    %6 = vector.broadcast %cst_6 : f32 to vector<8x1xf32>
    %7 = arith.divf %5, %6 : vector<8x1xf32>
    %8 = vector.broadcast %7 : vector<8x1xf32> to vector<8x32xf32>
    %9 = arith.subf %1, %8 : vector<8x32xf32>
    %10 = arith.mulf %9, %9 : vector<8x32xf32>
    %cst_7 = arith.constant dense<0.000000e+00> : vector<8xf32>
    %11 = vector.multi_reduction <add>, %10, %cst_7 [1] : vector<8x32xf32> to vector<8xf32>
    %12 = vector.shape_cast %11 : vector<8xf32> to vector<8x1xf32>
    %cst_8 = arith.constant 3.200000e+01 : f32
    %13 = vector.broadcast %cst_8 : f32 to vector<8x1xf32>
    %14 = arith.divf %12, %13 : vector<8x1xf32>
    %15 = vector.broadcast %7 : vector<8x1xf32> to vector<8x32xf32>
    %16 = arith.subf %1, %15 : vector<8x32xf32>
    %cst_9 = arith.constant 9.99999974E-6 : f32
    %17 = vector.broadcast %cst_9 : f32 to vector<8x1xf32>
    %18 = arith.addf %14, %17 : vector<8x1xf32>
    %19 = math.rsqrt %18 : vector<8x1xf32>
    %20 = vector.broadcast %19 : vector<8x1xf32> to vector<8x32xf32>
    %21 = arith.mulf %16, %20 : vector<8x32xf32>
    %22 = vector.broadcast %2 : vector<1x32xf32> to vector<8x32xf32>
    %23 = arith.mulf %21, %22 : vector<8x32xf32>
    %24 = vector.broadcast %3 : vector<1x32xf32> to vector<8x32xf32>
    %25 = arith.addf %23, %24 : vector<8x32xf32>
    %26 = arith.truncf %25 : vector<8x32xf32> to vector<8x32xbf16>
    %c0_10 = arith.constant 0 : index
    %c0_11 = arith.constant 0 : index
    %27 = vector.load %arg4[%c0_10, %c0_11] : memref<32x96xbf16, #tpu.memory_space<vmem>>, vector<32x96xbf16>
    %cst_12 = arith.constant dense<0.000000e+00> : vector<8x96xf32>
    %28 = tpu.matmul %26, %27, %cst_12 {dimension_numbers = #tpu.dot_dimension_numbers<[1], [0], [0], [1], [0, 0, 1, 1], [], []>} : vector<8x32xbf16>, vector<32x96xbf16>, vector<8x96xf32> -> vector<8x96xf32>
    %c0_13 = arith.constant 0 : index
    %c0_14 = arith.constant 0 : index
    %29 = vector.load %arg5[%c0_13, %c0_14] : memref<1x96xf32, #tpu.memory_space<vmem>>, vector<1x96xf32>
    %30 = vector.broadcast %29 : vector<1x96xf32> to vector<8x96xf32>
    %31 = arith.addf %28, %30 : vector<8x96xf32>
    %32 = vector.extract_strided_slice %31 {offsets = [0, 0], sizes = [8, 32], strides = [1, 1]} : vector<8x96xf32> to vector<8x32xf32>
    %33 = vector.shape_cast %32 : vector<8x32xf32> to vector<1x8x32xf32>
    %34 = vector.extract_strided_slice %31 {offsets = [0, 32], sizes = [8, 32], strides = [1, 1]} : vector<8x96xf32> to vector<8x32xf32>
    %35 = vector.shape_cast %34 : vector<8x32xf32> to vector<1x8x32xf32>
    %36 = vector.extract_strided_slice %31 {offsets = [0, 64], sizes = [8, 32], strides = [1, 1]} : vector<8x96xf32> to vector<8x32xf32>
    %37 = vector.shape_cast %36 : vector<8x32xf32> to vector<1x8x32xf32>
    %38 = vector.extract_strided_slice %33 {offsets = [0, 0, 0], sizes = [1, 8, 8], strides = [1, 1, 1]} : vector<1x8x32xf32> to vector<1x8x8xf32>
    %39 = arith.truncf %38 : vector<1x8x8xf32> to vector<1x8x8xbf16>
    %40 = vector.extract_strided_slice %35 {offsets = [0, 0, 0], sizes = [1, 8, 8], strides = [1, 1, 1]} : vector<1x8x32xf32> to vector<1x8x8xf32>
    %41 = arith.truncf %40 : vector<1x8x8xf32> to vector<1x8x8xbf16>
    %42 = vector.extract_strided_slice %37 {offsets = [0, 0, 0], sizes = [1, 8, 8], strides = [1, 1, 1]} : vector<1x8x32xf32> to vector<1x8x8xf32>
    %43 = arith.truncf %42 : vector<1x8x8xf32> to vector<1x8x8xbf16>
    "tpu.trace_start"() <{level = 10 : i32, message = "bld,bmd->blm"}> : () -> ()
    %cst_15 = arith.constant dense<0.000000e+00> : vector<1x8x8xf32>
    %44 = tpu.matmul %39, %41, %cst_15 {dimension_numbers = #tpu.dot_dimension_numbers<[2], [2], [1], [1], [0, 0, 0, 1, 1, 1], [0], [0]>} : vector<1x8x8xbf16>, vector<1x8x8xbf16>, vector<1x8x8xf32> -> vector<1x8x8xf32>
    "tpu.trace_stop"() : () -> ()
    %cst_16 = arith.constant 0.353553385 : f32
    %45 = vector.broadcast %cst_16 : f32 to vector<1x8x8xf32>
    %46 = arith.mulf %44, %45 : vector<1x8x8xf32>
    %cst_17 = arith.constant dense<0xFF800000> : vector<1x8xf32>
    %47 = vector.multi_reduction <maximumf>, %46, %cst_17 [2] : vector<1x8x8xf32> to vector<1x8xf32>
    %48 = vector.shape_cast %47 : vector<1x8xf32> to vector<1x8x1xf32>
    %49 = vector.broadcast %48 : vector<1x8x1xf32> to vector<1x8x8xf32>
    %50 = arith.subf %46, %49 : vector<1x8x8xf32>
    %51 = math.exp %50 : vector<1x8x8xf32>
    %cst_18 = arith.constant dense<0.000000e+00> : vector<1x8xf32>
    %52 = vector.multi_reduction <add>, %51, %cst_18 [2] : vector<1x8x8xf32> to vector<1x8xf32>
    %53 = vector.shape_cast %52 : vector<1x8xf32> to vector<1x8x1xf32>
    %54 = tpu.reciprocal %53 {approx = true} : vector<1x8x1xf32> -> vector<1x8x1xf32>
    %55 = vector.broadcast %54 : vector<1x8x1xf32> to vector<1x8x8xf32>
    %56 = arith.mulf %51, %55 : vector<1x8x8xf32>
    %57 = arith.truncf %56 : vector<1x8x8xf32> to vector<1x8x8xbf16>
    "tpu.trace_start"() <{level = 10 : i32, message = "blm,bmd->bld"}> : () -> ()
    %cst_19 = arith.constant dense<0.000000e+00> : vector<1x8x8xf32>
    %58 = tpu.matmul %57, %43, %cst_19 {dimension_numbers = #tpu.dot_dimension_numbers<[2], [1], [1], [2], [0, 0, 0, 1, 1, 2], [0], [0]>} : vector<1x8x8xbf16>, vector<1x8x8xbf16>, vector<1x8x8xf32> -> vector<1x8x8xf32>
    "tpu.trace_stop"() : () -> ()
    %c0_20 = arith.constant 0 : index
    %c0_21 = arith.constant 0 : index
    %c0_22 = arith.constant 0 : index
    %59 = vector.load %arg15[%c0_20, %c0_21, %c0_22] : memref<1x8x32xf32, #tpu.memory_space<vmem>>, vector<1x8x8xf32>
    tpu.vector_store %arg15[%c0_20, %c0_21, %c0_22], %58 {strides = array<i32>} : memref<1x8x32xf32, #tpu.memory_space<vmem>>, vector<1x8x8xf32>,
    %60 = vector.extract_strided_slice %33 {offsets = [0, 0, 8], sizes = [1, 8, 8], strides = [1, 1, 1]} : vector<1x8x32xf32> to vector<1x8x8xf32>
    %61 = arith.truncf %60 : vector<1x8x8xf32> to vector<1x8x8xbf16>
    %62 = vector.extract_strided_slice %35 {offsets = [0, 0, 8], sizes = [1, 8, 8], strides = [1, 1, 1]} : vector<1x8x32xf32> to vector<1x8x8xf32>
    %63 = arith.truncf %62 : vector<1x8x8xf32> to vector<1x8x8xbf16>
    %64 = vector.extract_strided_slice %37 {offsets = [0, 0, 8], sizes = [1, 8, 8], strides = [1, 1, 1]} : vector<1x8x32xf32> to vector<1x8x8xf32>
    %65 = arith.truncf %64 : vector<1x8x8xf32> to vector<1x8x8xbf16>
    "tpu.trace_start"() <{level = 10 : i32, message = "bld,bmd->blm"}> : () -> ()
    %cst_23 = arith.constant dense<0.000000e+00> : vector<1x8x8xf32>
    %66 = tpu.matmul %61, %63, %cst_23 {dimension_numbers = #tpu.dot_dimension_numbers<[2], [2], [1], [1], [0, 0, 0, 1, 1, 1], [0], [0]>} : vector<1x8x8xbf16>, vector<1x8x8xbf16>, vector<1x8x8xf32> -> vector<1x8x8xf32>
    "tpu.trace_stop"() : () -> ()
    %cst_24 = arith.constant 0.353553385 : f32
    %67 = vector.broadcast %cst_24 : f32 to vector<1x8x8xf32>
    %68 = arith.mulf %66, %67 : vector<1x8x8xf32>
    %cst_25 = arith.constant dense<0xFF800000> : vector<1x8xf32>
    %69 = vector.multi_reduction <maximumf>, %68, %cst_25 [2] : vector<1x8x8xf32> to vector<1x8xf32>
    %70 = vector.shape_cast %69 : vector<1x8xf32> to vector<1x8x1xf32>
    %71 = vector.broadcast %70 : vector<1x8x1xf32> to vector<1x8x8xf32>
    %72 = arith.subf %68, %71 : vector<1x8x8xf32>
    %73 = math.exp %72 : vector<1x8x8xf32>
    %cst_26 = arith.constant dense<0.000000e+00> : vector<1x8xf32>
    %74 = vector.multi_reduction <add>, %73, %cst_26 [2] : vector<1x8x8xf32> to vector<1x8xf32>
    %75 = vector.shape_cast %74 : vector<1x8xf32> to vector<1x8x1xf32>
    %76 = tpu.reciprocal %75 {approx = true} : vector<1x8x1xf32> -> vector<1x8x1xf32>
    %77 = vector.broadcast %76 : vector<1x8x1xf32> to vector<1x8x8xf32>
    %78 = arith.mulf %73, %77 : vector<1x8x8xf32>
    %79 = arith.truncf %78 : vector<1x8x8xf32> to vector<1x8x8xbf16>
    "tpu.trace_start"() <{level = 10 : i32, message = "blm,bmd->bld"}> : () -> ()
    %cst_27 = arith.constant dense<0.000000e+00> : vector<1x8x8xf32>
    %80 = tpu.matmul %79, %65, %cst_27 {dimension_numbers = #tpu.dot_dimension_numbers<[2], [1], [1], [2], [0, 0, 0, 1, 1, 2], [0], [0]>} : vector<1x8x8xbf16>, vector<1x8x8xbf16>, vector<1x8x8xf32> -> vector<1x8x8xf32>
    "tpu.trace_stop"() : () -> ()
    %c0_28 = arith.constant 0 : index
    %c0_29 = arith.constant 0 : index
    %c8 = arith.constant 8 : index
    %81 = vector.load %arg15[%c0_28, %c0_29, %c8] : memref<1x8x32xf32, #tpu.memory_space<vmem>>, vector<1x8x8xf32>
    tpu.vector_store %arg15[%c0_28, %c0_29, %c8], %80 {strides = array<i32>} : memref<1x8x32xf32, #tpu.memory_space<vmem>>, vector<1x8x8xf32>,
    %82 = vector.extract_strided_slice %33 {offsets = [0, 0, 16], sizes = [1, 8, 8], strides = [1, 1, 1]} : vector<1x8x32xf32> to vector<1x8x8xf32>
    %83 = arith.truncf %82 : vector<1x8x8xf32> to vector<1x8x8xbf16>
    %84 = vector.extract_strided_slice %35 {offsets = [0, 0, 16], sizes = [1, 8, 8], strides = [1, 1, 1]} : vector<1x8x32xf32> to vector<1x8x8xf32>
    %85 = arith.truncf %84 : vector<1x8x8xf32> to vector<1x8x8xbf16>
    %86 = vector.extract_strided_slice %37 {offsets = [0, 0, 16], sizes = [1, 8, 8], strides = [1, 1, 1]} : vector<1x8x32xf32> to vector<1x8x8xf32>
    %87 = arith.truncf %86 : vector<1x8x8xf32> to vector<1x8x8xbf16>
    "tpu.trace_start"() <{level = 10 : i32, message = "bld,bmd->blm"}> : () -> ()
    %cst_30 = arith.constant dense<0.000000e+00> : vector<1x8x8xf32>
    %88 = tpu.matmul %83, %85, %cst_30 {dimension_numbers = #tpu.dot_dimension_numbers<[2], [2], [1], [1], [0, 0, 0, 1, 1, 1], [0], [0]>} : vector<1x8x8xbf16>, vector<1x8x8xbf16>, vector<1x8x8xf32> -> vector<1x8x8xf32>
    "tpu.trace_stop"() : () -> ()
    %cst_31 = arith.constant 0.353553385 : f32
    %89 = vector.broadcast %cst_31 : f32 to vector<1x8x8xf32>
    %90 = arith.mulf %88, %89 : vector<1x8x8xf32>
    %cst_32 = arith.constant dense<0xFF800000> : vector<1x8xf32>
    %91 = vector.multi_reduction <maximumf>, %90, %cst_32 [2] : vector<1x8x8xf32> to vector<1x8xf32>
    %92 = vector.shape_cast %91 : vector<1x8xf32> to vector<1x8x1xf32>
    %93 = vector.broadcast %92 : vector<1x8x1xf32> to vector<1x8x8xf32>
    %94 = arith.subf %90, %93 : vector<1x8x8xf32>
    %95 = math.exp %94 : vector<1x8x8xf32>
    %cst_33 = arith.constant dense<0.000000e+00> : vector<1x8xf32>
    %96 = vector.multi_reduction <add>, %95, %cst_33 [2] : vector<1x8x8xf32> to vector<1x8xf32>
    %97 = vector.shape_cast %96 : vector<1x8xf32> to vector<1x8x1xf32>
    %98 = tpu.reciprocal %97 {approx = true} : vector<1x8x1xf32> -> vector<1x8x1xf32>
    %99 = vector.broadcast %98 : vector<1x8x1xf32> to vector<1x8x8xf32>
    %100 = arith.mulf %95, %99 : vector<1x8x8xf32>
    %101 = arith.truncf %100 : vector<1x8x8xf32> to vector<1x8x8xbf16>
    "tpu.trace_start"() <{level = 10 : i32, message = "blm,bmd->bld"}> : () -> ()
    %cst_34 = arith.constant dense<0.000000e+00> : vector<1x8x8xf32>
    %102 = tpu.matmul %101, %87, %cst_34 {dimension_numbers = #tpu.dot_dimension_numbers<[2], [1], [1], [2], [0, 0, 0, 1, 1, 2], [0], [0]>} : vector<1x8x8xbf16>, vector<1x8x8xbf16>, vector<1x8x8xf32> -> vector<1x8x8xf32>
    "tpu.trace_stop"() : () -> ()
    %c0_35 = arith.constant 0 : index
    %c0_36 = arith.constant 0 : index
    %c16 = arith.constant 16 : index
    %103 = vector.load %arg15[%c0_35, %c0_36, %c16] : memref<1x8x32xf32, #tpu.memory_space<vmem>>, vector<1x8x8xf32>
    tpu.vector_store %arg15[%c0_35, %c0_36, %c16], %102 {strides = array<i32>} : memref<1x8x32xf32, #tpu.memory_space<vmem>>, vector<1x8x8xf32>,
    %104 = vector.extract_strided_slice %33 {offsets = [0, 0, 24], sizes = [1, 8, 8], strides = [1, 1, 1]} : vector<1x8x32xf32> to vector<1x8x8xf32>
    %105 = arith.truncf %104 : vector<1x8x8xf32> to vector<1x8x8xbf16>
    %106 = vector.extract_strided_slice %35 {offsets = [0, 0, 24], sizes = [1, 8, 8], strides = [1, 1, 1]} : vector<1x8x32xf32> to vector<1x8x8xf32>
    %107 = arith.truncf %106 : vector<1x8x8xf32> to vector<1x8x8xbf16>
    %108 = vector.extract_strided_slice %37 {offsets = [0, 0, 24], sizes = [1, 8, 8], strides = [1, 1, 1]} : vector<1x8x32xf32> to vector<1x8x8xf32>
    %109 = arith.truncf %108 : vector<1x8x8xf32> to vector<1x8x8xbf16>
    "tpu.trace_start"() <{level = 10 : i32, message = "bld,bmd->blm"}> : () -> ()
    %cst_37 = arith.constant dense<0.000000e+00> : vector<1x8x8xf32>
    %110 = tpu.matmul %105, %107, %cst_37 {dimension_numbers = #tpu.dot_dimension_numbers<[2], [2], [1], [1], [0, 0, 0, 1, 1, 1], [0], [0]>} : vector<1x8x8xbf16>, vector<1x8x8xbf16>, vector<1x8x8xf32> -> vector<1x8x8xf32>
    "tpu.trace_stop"() : () -> ()
    %cst_38 = arith.constant 0.353553385 : f32
    %111 = vector.broadcast %cst_38 : f32 to vector<1x8x8xf32>
    %112 = arith.mulf %110, %111 : vector<1x8x8xf32>
    %cst_39 = arith.constant dense<0xFF800000> : vector<1x8xf32>
    %113 = vector.multi_reduction <maximumf>, %112, %cst_39 [2] : vector<1x8x8xf32> to vector<1x8xf32>
    %114 = vector.shape_cast %113 : vector<1x8xf32> to vector<1x8x1xf32>
    %115 = vector.broadcast %114 : vector<1x8x1xf32> to vector<1x8x8xf32>
    %116 = arith.subf %112, %115 : vector<1x8x8xf32>
    %117 = math.exp %116 : vector<1x8x8xf32>
    %cst_40 = arith.constant dense<0.000000e+00> : vector<1x8xf32>
    %118 = vector.multi_reduction <add>, %117, %cst_40 [2] : vector<1x8x8xf32> to vector<1x8xf32>
    %119 = vector.shape_cast %118 : vector<1x8xf32> to vector<1x8x1xf32>
    %120 = tpu.reciprocal %119 {approx = true} : vector<1x8x1xf32> -> vector<1x8x1xf32>
    %121 = vector.broadcast %120 : vector<1x8x1xf32> to vector<1x8x8xf32>
    %122 = arith.mulf %117, %121 : vector<1x8x8xf32>
    %123 = arith.truncf %122 : vector<1x8x8xf32> to vector<1x8x8xbf16>
    "tpu.trace_start"() <{level = 10 : i32, message = "blm,bmd->bld"}> : () -> ()
    %cst_41 = arith.constant dense<0.000000e+00> : vector<1x8x8xf32>
    %124 = tpu.matmul %123, %109, %cst_41 {dimension_numbers = #tpu.dot_dimension_numbers<[2], [1], [1], [2], [0, 0, 0, 1, 1, 2], [0], [0]>} : vector<1x8x8xbf16>, vector<1x8x8xbf16>, vector<1x8x8xf32> -> vector<1x8x8xf32>
    "tpu.trace_stop"() : () -> ()
    %c0_42 = arith.constant 0 : index
    %c0_43 = arith.constant 0 : index
    %c24 = arith.constant 24 : index
    %125 = vector.load %arg15[%c0_42, %c0_43, %c24] : memref<1x8x32xf32, #tpu.memory_space<vmem>>, vector<1x8x8xf32>
    tpu.vector_store %arg15[%c0_42, %c0_43, %c24], %124 {strides = array<i32>} : memref<1x8x32xf32, #tpu.memory_space<vmem>>, vector<1x8x8xf32>,
    %c0_44 = arith.constant 0 : index
    %c0_45 = arith.constant 0 : index
    %c0_46 = arith.constant 0 : index
    %126 = vector.load %arg15[%c0_44, %c0_45, %c0_46] : memref<1x8x32xf32, #tpu.memory_space<vmem>>, vector<1x8x32xf32>
    %127 = vector.shape_cast %126 : vector<1x8x32xf32> to vector<8x32xf32>
    %128 = arith.truncf %127 : vector<8x32xf32> to vector<8x32xbf16>
    %c0_47 = arith.constant 0 : index
    %c0_48 = arith.constant 0 : index
    %129 = vector.load %arg6[%c0_47, %c0_48] : memref<32x32xbf16, #tpu.memory_space<vmem>>, vector<32x32xbf16>
    %cst_49 = arith.constant dense<0.000000e+00> : vector<8x32xf32>
    %130 = tpu.matmul %128, %129, %cst_49 {dimension_numbers = #tpu.dot_dimension_numbers<[1], [0], [0], [1], [0, 0, 1, 1], [], []>} : vector<8x32xbf16>, vector<32x32xbf16>, vector<8x32xf32> -> vector<8x32xf32>
    %c0_50 = arith.constant 0 : index
    %c0_51 = arith.constant 0 : index
    %131 = vector.load %arg7[%c0_50, %c0_51] : memref<1x32xf32, #tpu.memory_space<vmem>>, vector<1x32xf32>
    %132 = vector.broadcast %131 : vector<1x32xf32> to vector<8x32xf32>
    %133 = arith.addf %130, %132 : vector<8x32xf32>
    %134 = arith.addf %1, %133 : vector<8x32xf32>
    %c0_52 = arith.constant 0 : index
    %c0_53 = arith.constant 0 : index
    %135 = vector.load %arg8[%c0_52, %c0_53] : memref<1x32xf32, #tpu.memory_space<vmem>>, vector<1x32xf32>
    %c0_54 = arith.constant 0 : index
    %c0_55 = arith.constant 0 : index
    %136 = vector.load %arg9[%c0_54, %c0_55] : memref<1x32xf32, #tpu.memory_space<vmem>>, vector<1x32xf32>
    %cst_56 = arith.constant dense<0.000000e+00> : vector<8xf32>
    %137 = vector.multi_reduction <add>, %134, %cst_56 [1] : vector<8x32xf32> to vector<8xf32>
    %138 = vector.shape_cast %137 : vector<8xf32> to vector<8x1xf32>
    %cst_57 = arith.constant 3.200000e+01 : f32
    %139 = vector.broadcast %cst_57 : f32 to vector<8x1xf32>
    %140 = arith.divf %138, %139 : vector<8x1xf32>
    %141 = vector.broadcast %140 : vector<8x1xf32> to vector<8x32xf32>
    %142 = arith.subf %134, %141 : vector<8x32xf32>
    %143 = arith.mulf %142, %142 : vector<8x32xf32>
    %cst_58 = arith.constant dense<0.000000e+00> : vector<8xf32>
    %144 = vector.multi_reduction <add>, %143, %cst_58 [1] : vector<8x32xf32> to vector<8xf32>
    %145 = vector.shape_cast %144 : vector<8xf32> to vector<8x1xf32>
    %cst_59 = arith.constant 3.200000e+01 : f32
    %146 = vector.broadcast %cst_59 : f32 to vector<8x1xf32>
    %147 = arith.divf %145, %146 : vector<8x1xf32>
    %148 = vector.broadcast %140 : vector<8x1xf32> to vector<8x32xf32>
    %149 = arith.subf %134, %148 : vector<8x32xf32>
    %cst_60 = arith.constant 9.99999974E-6 : f32
    %150 = vector.broadcast %cst_60 : f32 to vector<8x1xf32>
    %151 = arith.addf %147, %150 : vector<8x1xf32>
    %152 = math.rsqrt %151 : vector<8x1xf32>
    %153 = vector.broadcast %152 : vector<8x1xf32> to vector<8x32xf32>
    %154 = arith.mulf %149, %153 : vector<8x32xf32>
    %155 = vector.broadcast %135 : vector<1x32xf32> to vector<8x32xf32>
    %156 = arith.mulf %154, %155 : vector<8x32xf32>
    %157 = vector.broadcast %136 : vector<1x32xf32> to vector<8x32xf32>
    %158 = arith.addf %156, %157 : vector<8x32xf32>
    %159 = arith.truncf %158 : vector<8x32xf32> to vector<8x32xbf16>
    %c0_61 = arith.constant 0 : index
    %c0_62 = arith.constant 0 : index
    %160 = vector.load %arg10[%c0_61, %c0_62] : memref<32x128xbf16, #tpu.memory_space<vmem>>, vector<32x128xbf16>
    %cst_63 = arith.constant dense<0.000000e+00> : vector<8x128xf32>
    %161 = tpu.matmul %159, %160, %cst_63 {dimension_numbers = #tpu.dot_dimension_numbers<[1], [0], [0], [1], [0, 0, 1, 1], [], []>} : vector<8x32xbf16>, vector<32x128xbf16>, vector<8x128xf32> -> vector<8x128xf32>
    %c0_64 = arith.constant 0 : index
    %c0_65 = arith.constant 0 : index
    %162 = vector.load %arg11[%c0_64, %c0_65] : memref<1x128xf32, #tpu.memory_space<vmem>>, vector<1x128xf32>
    %163 = vector.broadcast %162 : vector<1x128xf32> to vector<8x128xf32>
    %164 = arith.addf %161, %163 : vector<8x128xf32>
    %cst_66 = arith.constant 1.702000e+00 : f32
    %165 = vector.broadcast %cst_66 : f32 to vector<8x128xf32>
    %166 = arith.mulf %165, %164 : vector<8x128xf32>
    %167 = arith.negf %166 : vector<8x128xf32>
    %168 = math.exp %167 : vector<8x128xf32>
    %cst_67 = arith.constant 1.000000e+00 : f32
    %169 = vector.broadcast %cst_67 : f32 to vector<8x128xf32>
    %170 = arith.addf %169, %168 : vector<8x128xf32>
    %171 = arith.divf %169, %170 : vector<8x128xf32>
    %172 = arith.mulf %164, %171 : vector<8x128xf32>
    %173 = arith.truncf %172 : vector<8x128xf32> to vector<8x128xbf16>
    %c0_68 = arith.constant 0 : index
    %c0_69 = arith.constant 0 : index
    %174 = vector.load %arg12[%c0_68, %c0_69] : memref<128x32xbf16, #tpu.memory_space<vmem>>, vector<128x32xbf16>
    %cst_70 = arith.constant dense<0.000000e+00> : vector<8x32xf32>
    %175 = tpu.matmul %173, %174, %cst_70 {dimension_numbers = #tpu.dot_dimension_numbers<[1], [0], [0], [1], [0, 0, 1, 1], [], []>} : vector<8x128xbf16>, vector<128x32xbf16>, vector<8x32xf32> -> vector<8x32xf32>
    %c0_71 = arith.constant 0 : index
    %c0_72 = arith.constant 0 : index
    %176 = vector.load %arg13[%c0_71, %c0_72] : memref<1x32xf32, #tpu.memory_space<vmem>>, vector<1x32xf32>
    %177 = vector.broadcast %176 : vector<1x32xf32> to vector<8x32xf32>
    %178 = arith.addf %175, %177 : vector<8x32xf32>
    %179 = arith.addf %134, %178 : vector<8x32xf32>
    %180 = vector.shape_cast %179 : vector<8x32xf32> to vector<1x8x32xf32>
    %c0_73 = arith.constant 0 : index
    %c0_74 = arith.constant 0 : index
    %c0_75 = arith.constant 0 : index
    %181 = vector.load %arg14[%c0_73, %c0_74, %c0_75] : memref<1x8x32xf32, #tpu.memory_space<vmem>>, vector<1x8x32xf32>
    tpu.vector_store %arg14[%c0_73, %c0_74, %c0_75], %180 {strides = array<i32>} : memref<1x8x32xf32, #tpu.memory_space<vmem>>, vector<1x8x32xf32>,
    return
  }
  func.func @transform_0(%arg0: i32) -> (i32, i32, i32) {
    %c0_i32 = arith.constant 0 : i32
    %c0_i32_0 = arith.constant 0 : i32
    %c0_i32_1 = arith.constant 0 : i32
    return %arg0, %c0_i32, %c0_i32_0 : i32, i32, i32
  }
  func.func @transform_1(%arg0: i32) -> (i32, i32) {
    %c0_i32 = arith.constant 0 : i32
    %c0_i32_0 = arith.constant 0 : i32
    %c0_i32_1 = arith.constant 0 : i32
    return %c0_i32, %c0_i32_0 : i32, i32
  }
  func.func @transform_2(%arg0: i32) -> (i32, i32) {
    %c0_i32 = arith.constant 0 : i32
    %c0_i32_0 = arith.constant 0 : i32
    %c0_i32_1 = arith.constant 0 : i32
    return %c0_i32, %c0_i32_0 : i32, i32
  }
  func.func @transform_3(%arg0: i32) -> (i32, i32) {
    %c0_i32 = arith.constant 0 : i32
    %c0_i32_0 = arith.constant 0 : i32
    %c0_i32_1 = arith.constant 0 : i32
    return %c0_i32, %c0_i32_0 : i32, i32
  }
  func.func @transform_4(%arg0: i32) -> (i32, i32) {
    %c0_i32 = arith.constant 0 : i32
    %c0_i32_0 = arith.constant 0 : i32
    %c0_i32_1 = arith.constant 0 : i32
    return %c0_i32, %c0_i32_0 : i32, i32
  }
  func.func @transform_5(%arg0: i32) -> (i32, i32) {
    %c0_i32 = arith.constant 0 : i32
    %c0_i32_0 = arith.constant 0 : i32
    %c0_i32_1 = arith.constant 0 : i32
    return %c0_i32, %c0_i32_0 : i32, i32
  }
  func.func @transform_6(%arg0: i32) -> (i32, i32) {
    %c0_i32 = arith.constant 0 : i32
    %c0_i32_0 = arith.constant 0 : i32
    %c0_i32_1 = arith.constant 0 : i32
    return %c0_i32, %c0_i32_0 : i32, i32
  }
  func.func @transform_7(%arg0: i32) -> (i32, i32) {
    %c0_i32 = arith.constant 0 : i32
    %c0_i32_0 = arith.constant 0 : i32
    %c0_i32_1 = arith.constant 0 : i32
    return %c0_i32, %c0_i32_0 : i32, i32
  }
  func.func @transform_8(%arg0: i32) -> (i32, i32) {
    %c0_i32 = arith.constant 0 : i32
    %c0_i32_0 = arith.constant 0 : i32
    %c0_i32_1 = arith.constant 0 : i32
    return %c0_i32, %c0_i32_0 : i32, i32
  }
  func.func @transform_9(%arg0: i32) -> (i32, i32) {
    %c0_i32 = arith.constant 0 : i32
    %c0_i32_0 = arith.constant 0 : i32
    %c0_i32_1 = arith.constant 0 : i32
    return %c0_i32, %c0_i32_0 : i32, i32
  }
  func.func @transform_10(%arg0: i32) -> (i32, i32) {
    %c0_i32 = arith.constant 0 : i32
    %c0_i32_0 = arith.constant 0 : i32
    %c0_i32_1 = arith.constant 0 : i32
    return %c0_i32, %c0_i32_0 : i32, i32
  }
  func.func @transform_11(%arg0: i32) -> (i32, i32) {
    %c0_i32 = arith.constant 0 : i32
    %c0_i32_0 = arith.constant 0 : i32
    %c0_i32_1 = arith.constant 0 : i32
    return %c0_i32, %c0_i32_0 : i32, i32
  }
  func.func @transform_12(%arg0: i32) -> (i32, i32) {
    %c0_i32 = arith.constant 0 : i32
    %c0_i32_0 = arith.constant 0 : i32
    %c0_i32_1 = arith.constant 0 : i32
    return %c0_i32, %c0_i32_0 : i32, i32
  }
  func.func @transform_13(%arg0: i32) -> (i32, i32, i32) {
    %c0_i32 = arith.constant 0 : i32
    %c0_i32_0 = arith.constant 0 : i32
    %c0_i32_1 = arith.constant 0 : i32
    return %arg0, %c0_i32, %c0_i32_0 : i32, i32, i32
  }
}

</mosaic_0001>

<bundles_post_ra>
// kernel: tpu_custom_call.1
= control target key start
LH: loop header
LB: loop body
LE: loop exit
PB: predicated region body
PF: predicated region fallthrough
CT: control target
= control target key end

     0   :  { %s3203_s0 = inlined_call_operand.hbm [shape: f32[2,8,32], index: 0, kind: input, shape index: {}]   ;;  %s3204_s1 = inlined_call_operand.hbm [shape: f32[1,32], index: 1, kind: input, shape index: {}]   ;;  %s3205_s2 = inlined_call_operand.hbm [shape: f32[1,32], index: 2, kind: input, shape index: {}]   ;;  %s3206_s3 = inlined_call_operand.hbm [shape: bf16[32,96], index: 3, kind: input, shape index: {}]   ;;  %s3207_s4 = inlined_call_operand.hbm [shape: f32[1,96], index: 4, kind: input, shape index: {}]   ;;  %s3208_s5 = inlined_call_operand.hbm [shape: bf16[32,32], index: 5, kind: input, shape index: {}]   ;;  %s3209_s6 = inlined_call_operand.hbm [shape: f32[1,32], index: 6, kind: input, shape index: {}]   ;;  %s3210_s7 = inlined_call_operand.hbm [shape: f32[1,32], index: 7, kind: input, shape index: {}]   ;;  %s3211_s8 = inlined_call_operand.hbm [shape: f32[1,32], index: 8, kind: input, shape index: {}]   ;;  %s3212_s9 = inlined_call_operand.hbm [shape: bf16[32,128], index: 9, kind: input, shape index: {}]   ;;  %s3213_s10 = inlined_call_operand.hbm [shape: f32[1,128], index: 10, kind: input, shape index: {}]   ;;  %s3214_s11 = inlined_call_operand.hbm [shape: bf16[128,32], index: 11, kind: input, shape index: {}]   ;;  %s3215_s12 = inlined_call_operand.hbm [shape: f32[1,32], index: 12, kind: input, shape index: {}]   ;;  %s3216_s13 = inlined_call_operand.hbm [shape: f32[2,8,32], index: 13, kind: output, shape index: {}]  }
   0x1   :  { %3226 = sst [smem:[#allocation35_spill]] %s3203_s0 }
   0x2   :  { %3227 = sst [smem:[#allocation36_spill]] %s3204_s1 }
   0x3   :  { %3228 = sst [smem:[#allocation37_spill]] %s3205_s2 }
   0x4   :  { %3229 = sst [smem:[#allocation38_spill]] %s3206_s3 }
   0x5   :  { %3230 = sst [smem:[#allocation39_spill]] %s3216_s13 }
   0x6   :  { %18 = vsyncpa [#allocation4], 0 }
   0x7   :  { %20 = vsyncpa [#allocation4 + $0x1], 0 }
   0x8   :  { %21 = vsyncpa [#allocation7], 0 }
   0x9   :  { %22 = vsyncpa [#allocation10], 0 }
   0xa   :  { %23 = vsyncpa [#allocation13], 0 }
   0xb   :  { %24 = vsyncpa [#allocation16], 0 }
   0xc   :  { %25 = vsyncpa [#allocation19], 0 }
   0xd   :  { %26 = vsyncpa [#allocation22], 0 }
   0xe   :  { %27 = vsyncpa [#allocation5], 0 }
   0xf   :  { %29 = vsyncpa [#allocation5 + $0x1], 0  ;;  %s2643_s25 = smov 0   ;;  %s2645_s26 = smov 0  }
  0x10   :  { %s2647_s27 = smov 0   ;;  %s2649_s28 = smov 0  }
  0x11 LB: > { %s2541_s29 = smov [#allocation6]   ;;  %s2664_s14 = sadd.s32 4294967295, %s2539_s28   ;;  %s2539_s28 = sphi %s2649_s28, %s3269_s28   ;;  %s2535_s27 = sphi %s2647_s27, %s3268_s27   ;;  %s2531_s26 = sphi %s2645_s26, %s3267_s26   ;;  %s2527_s25 = sphi %s2643_s25, %s3266_s25  }
  0x12   : > { %s357_s30 = sshll.u32 %s2541_s29, 4  ;;  %3231 = sst [smem:[#allocation33_spill]] %s2664_s14  ;;  %s2669_s30 = int_to_ptr.vmem [resolvable:$true] %s357_s30 }
  0x13   : > { %p1665_p0 = scmp.ge.s32.totalorder %s2539_s28, 1  ;;  %p3223_p1 = scmp.eq.s32.totalorder %s2664_s14, 0 }
  0x14   : > { %p344_p2 = scmp.lt.s32.totalorder %s2539_s28, 3  ;;  %s2542_s16 = smov [#allocation9]  }
  0x15   : > { %s378_s17 = sshll.u32 %s2542_s16, 4  ;;  %s2543_s19 = smov [#allocation12]   ;;  %s2678_s17 = int_to_ptr.vmem [resolvable:$true] %s378_s17 }
  0x16   : > { %p2671_p3 = pnand %p1665_p0, %p344_p2  ;;  %s402_s20 = sshll.u32 %s2543_s19, 4  ;;  %s2686_s20 = int_to_ptr.vmem [resolvable:$true] %s402_s20 }
  0x17   : > { %s3235_s1 = sld [smem:[#allocation36_spill]] }
  0x18   : > { %s3232_s15 = scalar_select %p2671_p3, 1, 0 }
  0x19   : > { %p1912_p5 = pneg %p2671_p3 }
  0x1a   : > { %3233 = sst [smem:[#allocation34_spill]] %s3232_s15 }
  0x1b   : > { %p2682_p6 = pnand %p1912_p5, %p3223_p1 }
  0x1d   : > { %s2083_s23 = scalar_lea.hbm %s3235_s1, 16  ;;  %p2696_p8 = pneg %p2682_p6 }
  0x1e   : > { %p2084_p7 = scmp.ne.s32.totalorder %s3235_s1, %s2083_s23  ;;  %p2090_p11 = scmp.lt.u32.totalorder %s2083_s23, %s3235_s1 }
  0x20   : > { %p2086_p9 = pnand %p2696_p8, %p2084_p7 }
  0x22   : > { %p2087_p10 = pneg %p2086_p9 }
  0x24   : > { %p2092_p12 = pnand %p2090_p11, %p2087_p10 }
  0x26   : > { %2095 = shalt.err (!%p2092_p12)
}
  0x27   : > { %s2096_s21 = scalar_lea.vmem %s2669_s30, 16  ;;  %s2103_s22 = scalar_lea.vmem %s2669_s30, 32 }
  0x28   : > { %p2097_p13 = scmp.ne.s32.totalorder %s2669_s30, %s2096_s21  ;;  %p2104_p5 = scmp.lt.s32.totalorder %s2669_s30, %s2669_s30 }
  0x29   : > { %p2105_p7 = scmp.lt.s32.totalorder %s2103_s22, %s2096_s21 }
  0x2a   : > { %p2099_p0 = pnand %p2097_p13, %p2696_p8 }
  0x2b   : > { %p2106_p9 = por %p2105_p7, %p2104_p5 }
  0x2c   : > { %p2100_p2 = pneg %p2099_p0 }
  0x2e   : > { %p2107_p4 = pnand %p2106_p9, %p2100_p2 }
  0x30   : > { %2110 = shalt.err (!%p2107_p4)
}
  0x31   : > { %1915 = dma.hbm_to_vmem [thread:$0]  (!%p2682_p6), %s3235_s1, 16, %s2669_s30, [#allocation7]  }
  0x32   : > { %s3237_s3 = sld [smem:[#allocation38_spill]] }
  0x38   : > { %s2111_s19 = scalar_lea.hbm %s3237_s3, 256 }
  0x39   : > { %p2112_p10 = scmp.ne.s32.totalorder %s3237_s3, %s2111_s19  ;;  %p2118_p4 = scmp.lt.u32.totalorder %s2111_s19, %s3237_s3 }
  0x3b   : > { %p2114_p11 = pnand %p2112_p10, %p2696_p8 }
  0x3d   : > { %p2115_p12 = pneg %p2114_p11 }
  0x3f   : > { %p2120_p13 = pnand %p2118_p4, %p2115_p12 }
  0x41   : > { %2123 = shalt.err (!%p2120_p13)
}
  0x42   : > { %s2124_s30 = scalar_lea.vmem %s2678_s17, 256  ;;  %p2132_p7 = scmp.lt.s32.totalorder %s2678_s17, %s2678_s17 }
  0x43   : > { %p2125_p0 = scmp.ne.s32.totalorder %s2678_s17, %s2124_s30  ;;  %p2133_p9 = scmp.lt.s32.totalorder %s2124_s30, %s2124_s30 }
  0x45   : > { %p2127_p2 = pnand %p2125_p0, %p2696_p8  ;;  %p2134_p10 = por %p2133_p9, %p2132_p7 }
  0x47   : > { %p2128_p5 = pneg %p2127_p2 }
  0x49   : > { %p2135_p11 = pnand %p2134_p10, %p2128_p5 }
  0x4b   : > { %2138 = shalt.err (!%p2135_p11)
}
  0x4c   : > { %s2544_s0 = smov 64   ;;  %s2545_s15 = smov 4  }
  0x4d   : > { %1921 = dma.hbm_to_vmem [thread:$0]  (!%p2682_p6), %s3237_s3, 256, %s2678_s17, [#allocation10], %s2544_s0, %s2544_s0, %s2545_s15  }
  0x4e   : > { %s2139_s19 = scalar_lea.hbm %s3208_s5, 256 }
  0x4f   : > { %p2140_p12 = scmp.ne.s32.totalorder %s3208_s5, %s2139_s19  ;;  %p2146_p0 = scmp.lt.u32.totalorder %s2139_s19, %s3208_s5 }
  0x51   : > { %p2142_p4 = pnand %p2140_p12, %p2696_p8 }
  0x53   : > { %p2143_p13 = pneg %p2142_p4 }
  0x55   : > { %p2148_p2 = pnand %p2146_p0, %p2143_p13 }
  0x57   : > { %2151 = shalt.err (!%p2148_p2)
}
  0x58   : > { %s2152_s17 = scalar_lea.vmem %s2686_s20, 256  ;;  %p2160_p10 = scmp.lt.s32.totalorder %s2686_s20, %s2686_s20 }
  0x59   : > { %p2153_p5 = scmp.ne.s32.totalorder %s2686_s20, %s2152_s17  ;;  %p2161_p11 = scmp.lt.s32.totalorder %s2152_s17, %s2152_s17 }
  0x5b   : > { %p2155_p7 = pnand %p2153_p5, %p2696_p8  ;;  %p2162_p12 = por %p2161_p11, %p2160_p10 }
  0x5d   : > { %p2156_p9 = pneg %p2155_p7 }
  0x5f   : > { %p2163_p4 = pnand %p2162_p12, %p2156_p9 }
  0x61   : > { %2166 = shalt.err (!%p2163_p4)
}
  0x62   : > { %1927 = dma.hbm_to_vmem [thread:$0]  (!%p2682_p6), %s3208_s5, 256, %s2686_s20, [#allocation13], %s2544_s0, %s2544_s0, %s2545_s15  }
  0x63   : > { %s2546_s23 = smov [#allocation15]   ;;  %s2547_s29 = smov [#allocation18]  }
  0x64   : > { %s427_s24 = sshll.u32 %s2546_s23, 4  ;;  %s448_s19 = sshll.u32 %s2547_s29, 4  ;;  %s428_s24 = int_to_ptr.vmem [resolvable:$true] %s427_s24  ;;  %s449_s19 = int_to_ptr.vmem [resolvable:$true] %s448_s19 }
  0x65   : > { %s2167_s30 = scalar_lea.hbm %s3210_s7, 16 }
  0x66   : > { %p2168_p13 = scmp.ne.s32.totalorder %s3210_s7, %s2167_s30  ;;  %p2174_p5 = scmp.lt.u32.totalorder %s2167_s30, %s3210_s7 }
  0x68   : > { %p2170_p0 = pnand %p2168_p13, %p2696_p8 }
  0x6a   : > { %p2171_p2 = pneg %p2170_p0 }
  0x6c   : > { %p2176_p7 = pnand %p2174_p5, %p2171_p2 }
  0x6e   : > { %2179 = shalt.err (!%p2176_p7)
}
  0x6f   : > { %s2180_s20 = scalar_lea.vmem %s428_s24, 16  ;;  %s2187_s13 = scalar_lea.vmem %s428_s24, 32 }
  0x70   : > { %p2181_p9 = scmp.ne.s32.totalorder %s428_s24, %s2180_s20  ;;  %p2188_p12 = scmp.lt.s32.totalorder %s428_s24, %s428_s24 }
  0x71   : > { %p2189_p4 = scmp.lt.s32.totalorder %s2187_s13, %s2180_s20 }
  0x72   : > { %p2183_p10 = pnand %p2181_p9, %p2696_p8 }
  0x73   : > { %p2190_p1 = por %p2189_p4, %p2188_p12 }
  0x74   : > { %p2184_p11 = pneg %p2183_p10 }
  0x76   : > { %p2191_p3 = pnand %p2190_p1, %p2184_p11 }
  0x78   : > { %2194 = shalt.err (!%p2191_p3)
}
  0x79   : > { %1933 = dma.hbm_to_vmem [thread:$0]  (!%p2682_p6), %s3210_s7, 16, %s428_s24, [#allocation16]  }
  0x7a   : > { %s2195_s21 = scalar_lea.hbm %s3212_s9, 256 }
  0x7b   : > { %p2196_p13 = scmp.ne.s32.totalorder %s3212_s9, %s2195_s21  ;;  %p2202_p3 = scmp.lt.u32.totalorder %s2195_s21, %s3212_s9 }
  0x7d   : > { %p2198_p0 = pnand %p2196_p13, %p2696_p8 }
  0x7f   : > { %p2199_p1 = pneg %p2198_p0 }
  0x81   : > { %p2204_p2 = pnand %p2202_p3, %p2199_p1 }
  0x83   : > { %2207 = shalt.err (!%p2204_p2)
}
  0x84   : > { %s2208_s20 = scalar_lea.vmem %s449_s19, 256  ;;  %p2216_p10 = scmp.lt.s32.totalorder %s449_s19, %s449_s19 }
  0x85   : > { %p2209_p5 = scmp.ne.s32.totalorder %s449_s19, %s2208_s20  ;;  %p2217_p11 = scmp.lt.s32.totalorder %s2208_s20, %s2208_s20 }
  0x87   : > { %p2211_p7 = pnand %p2209_p5, %p2696_p8  ;;  %p2218_p12 = por %p2217_p11, %p2216_p10 }
  0x89   : > { %p2212_p9 = pneg %p2211_p7 }
  0x8b   : > { %p2219_p4 = pnand %p2218_p12, %p2212_p9 }
  0x8d   : > { %2222 = shalt.err (!%p2219_p4)
}
  0x8e   : > { %1939 = dma.hbm_to_vmem [thread:$0]  (!%p2682_p6), %s3212_s9, 256, %s449_s19, [#allocation19], %s2544_s0, %s2544_s0, %s2545_s15  }
  0x8f   : > { %s2548_s3 = smov [#allocation21]   ;;  %s2549_s14 = smov [#allocation8]  }
  0x90   : > { %s472_s23 = sshll.u32 %s2548_s3, 4  ;;  %s368_s29 = sshll.u32 %s2549_s14, 4  ;;  %s473_s23 = int_to_ptr.vmem [resolvable:$true] %s472_s23  ;;  %s369_s29 = int_to_ptr.vmem [resolvable:$true] %s368_s29 }
  0x91   : > { %s2223_s30 = scalar_lea.hbm %s3214_s11, 1024 }
  0x92   : > { %p2224_p13 = scmp.ne.s32.totalorder %s3214_s11, %s2223_s30  ;;  %p2230_p3 = scmp.lt.u32.totalorder %s2223_s30, %s3214_s11 }
  0x94   : > { %p2226_p0 = pnand %p2224_p13, %p2696_p8 }
  0x96   : > { %p2227_p1 = pneg %p2226_p0 }
  0x98   : > { %p2232_p2 = pnand %p2230_p3, %p2227_p1 }
  0x9a   : > { %2235 = shalt.err (!%p2232_p2)
}
  0x9b   : > { %s2236_s19 = scalar_lea.vmem %s473_s23, 1024  ;;  %p2244_p10 = scmp.lt.s32.totalorder %s473_s23, %s473_s23 }
  0x9c   : > { %p2237_p5 = scmp.ne.s32.totalorder %s473_s23, %s2236_s19  ;;  %p2245_p11 = scmp.lt.s32.totalorder %s2236_s19, %s2236_s19 }
  0x9e   : > { %p2239_p7 = pnand %p2237_p5, %p2696_p8  ;;  %p2246_p12 = por %p2245_p11, %p2244_p10 }
  0xa0   : > { %p2240_p9 = pneg %p2239_p7 }
  0xa2   : > { %p2247_p4 = pnand %p2246_p12, %p2240_p9 }
  0xa4   : > { %2250 = shalt.err (!%p2247_p4)
}
  0xa5   : > { %1945 = dma.hbm_to_vmem [thread:$0]  (!%p2682_p6), %s3214_s11, 1024, %s473_s23, [#allocation22], %s2544_s0, %s2544_s0, %s2545_s15  }
  0xa6   : > { %s3238_s2 = sld [smem:[#allocation37_spill]] }
  0xac   : > { %s2251_s22 = scalar_lea.hbm %s3238_s2, 16 }
  0xad   : > { %p2252_p13 = scmp.ne.s32.totalorder %s3238_s2, %s2251_s22  ;;  %p2258_p3 = scmp.lt.u32.totalorder %s2251_s22, %s3238_s2 }
  0xaf   : > { %p2254_p0 = pnand %p2252_p13, %p2696_p8 }
  0xb1   : > { %p2255_p1 = pneg %p2254_p0 }
  0xb3   : > { %p2260_p2 = pnand %p2258_p3, %p2255_p1 }
  0xb5   : > { %2263 = shalt.err (!%p2260_p2)
}
  0xb6   : > { %s2264_s24 = scalar_lea.vmem %s369_s29, 16  ;;  %s2271_s0 = scalar_lea.vmem %s369_s29, 32 }
  0xb7   : > { %p2265_p5 = scmp.ne.s32.totalorder %s369_s29, %s2264_s24  ;;  %p2272_p10 = scmp.lt.s32.totalorder %s369_s29, %s369_s29 }
  0xb8   : > { %p2273_p11 = scmp.lt.s32.totalorder %s2271_s0, %s2264_s24 }
  0xb9   : > { %p2267_p7 = pnand %p2265_p5, %p2696_p8 }
  0xba   : > { %p2274_p12 = por %p2273_p11, %p2272_p10 }
  0xbb   : > { %p2268_p9 = pneg %p2267_p7 }
  0xbd   : > { %p2275_p4 = pnand %p2274_p12, %p2268_p9 }
  0xbf   : > { %2278 = shalt.err (!%p2275_p4)
}
  0xc0   : > { %1918 = dma.hbm_to_vmem [thread:$0]  (!%p2682_p6), %s3238_s2, 16, %s369_s29, [#allocation7]  }
  0xc1   : > { %s2550_s19 = smov [#allocation11]   ;;  %s2551_s3 = smov [#allocation14]  }
  0xc2   : > { %s392_s13 = sshll.u32 %s2550_s19, 4  ;;  %s416_s14 = sshll.u32 %s2551_s3, 4  ;;  %s393_s13 = int_to_ptr.vmem [resolvable:$true] %s392_s13  ;;  %s417_s14 = int_to_ptr.vmem [resolvable:$true] %s416_s14 }
  0xc3   : > { %s2279_s30 = scalar_lea.hbm %s3207_s4, 16 }
  0xc4   : > { %p2280_p13 = scmp.ne.s32.totalorder %s3207_s4, %s2279_s30  ;;  %p2286_p3 = scmp.lt.u32.totalorder %s2279_s30, %s3207_s4 }
  0xc6   : > { %p2282_p0 = pnand %p2280_p13, %p2696_p8 }
  0xc8   : > { %p2283_p1 = pneg %p2282_p0 }
  0xca   : > { %p2288_p2 = pnand %p2286_p3, %p2283_p1 }
  0xcc   : > { %2291 = shalt.err (!%p2288_p2)
}
  0xcd   : > { %s2292_s29 = scalar_lea.vmem %s393_s13, 16  ;;  %s2299_s0 = scalar_lea.vmem %s393_s13, 32 }
  0xce   : > { %p2293_p5 = scmp.ne.s32.totalorder %s393_s13, %s2292_s29  ;;  %p2300_p10 = scmp.lt.s32.totalorder %s393_s13, %s393_s13 }
  0xcf   : > { %p2301_p11 = scmp.lt.s32.totalorder %s2299_s0, %s2292_s29 }
  0xd0   : > { %p2295_p7 = pnand %p2293_p5, %p2696_p8 }
  0xd1   : > { %p2302_p12 = por %p2301_p11, %p2300_p10 }
  0xd2   : > { %p2296_p9 = pneg %p2295_p7 }
  0xd4   : > { %p2303_p4 = pnand %p2302_p12, %p2296_p9 }
  0xd6   : > { %2306 = shalt.err (!%p2303_p4)
}
  0xd7   : > { %1924 = dma.hbm_to_vmem [thread:$0]  (!%p2682_p6), %s3207_s4, 16, %s393_s13, [#allocation10]  }
  0xd8   : > { %s2307_s21 = scalar_lea.hbm %s3209_s6, 16 }
  0xd9   : > { %p2308_p13 = scmp.ne.s32.totalorder %s3209_s6, %s2307_s21  ;;  %p2314_p3 = scmp.lt.u32.totalorder %s2307_s21, %s3209_s6 }
  0xdb   : > { %p2310_p0 = pnand %p2308_p13, %p2696_p8 }
  0xdd   : > { %p2311_p1 = pneg %p2310_p0 }
  0xdf   : > { %p2316_p2 = pnand %p2314_p3, %p2311_p1 }
  0xe1   : > { %2319 = shalt.err (!%p2316_p2)
}
  0xe2   : > { %s2320_s20 = scalar_lea.vmem %s417_s14, 16  ;;  %s2327_s13 = scalar_lea.vmem %s417_s14, 32 }
  0xe3   : > { %p2321_p5 = scmp.ne.s32.totalorder %s417_s14, %s2320_s20  ;;  %p2328_p10 = scmp.lt.s32.totalorder %s417_s14, %s417_s14 }
  0xe4   : > { %p2329_p11 = scmp.lt.s32.totalorder %s2327_s13, %s2320_s20 }
  0xe5   : > { %p2323_p7 = pnand %p2321_p5, %p2696_p8 }
  0xe6   : > { %p2330_p12 = por %p2329_p11, %p2328_p10 }
  0xe7   : > { %p2324_p9 = pneg %p2323_p7 }
  0xe9   : > { %p2331_p4 = pnand %p2330_p12, %p2324_p9 }
  0xeb   : > { %2334 = shalt.err (!%p2331_p4)
}
  0xec   : > { %1930 = dma.hbm_to_vmem [thread:$0]  (!%p2682_p6), %s3209_s6, 16, %s417_s14, [#allocation13]  }
  0xed   : > { %s2552_s0 = smov [#allocation17]   ;;  %s2553_s23 = smov [#allocation20]  }
  0xee   : > { %s438_s15 = sshll.u32 %s2552_s0, 4  ;;  %s462_s19 = sshll.u32 %s2553_s23, 4  ;;  %s439_s15 = int_to_ptr.vmem [resolvable:$true] %s438_s15  ;;  %s463_s19 = int_to_ptr.vmem [resolvable:$true] %s462_s19 }
  0xef   : > { %s2335_s22 = scalar_lea.hbm %s3211_s8, 16 }
  0xf0   : > { %p2336_p13 = scmp.ne.s32.totalorder %s3211_s8, %s2335_s22  ;;  %p2342_p3 = scmp.lt.u32.totalorder %s2335_s22, %s3211_s8 }
  0xf2   : > { %p2338_p0 = pnand %p2336_p13, %p2696_p8 }
  0xf4   : > { %p2339_p1 = pneg %p2338_p0 }
  0xf6   : > { %p2344_p2 = pnand %p2342_p3, %p2339_p1 }
  0xf8   : > { %2347 = shalt.err (!%p2344_p2)
}
  0xf9   : > { %s2348_s14 = scalar_lea.vmem %s439_s15, 16  ;;  %s2355_s13 = scalar_lea.vmem %s439_s15, 32 }
  0xfa   : > { %p2349_p5 = scmp.ne.s32.totalorder %s439_s15, %s2348_s14  ;;  %p2356_p10 = scmp.lt.s32.totalorder %s439_s15, %s439_s15 }
  0xfb   : > { %p2357_p11 = scmp.lt.s32.totalorder %s2355_s13, %s2348_s14 }
  0xfc   : > { %p2351_p7 = pnand %p2349_p5, %p2696_p8 }
  0xfd   : > { %p2358_p12 = por %p2357_p11, %p2356_p10 }
  0xfe   : > { %p2352_p9 = pneg %p2351_p7 }
 0x100   : > { %p2359_p4 = pnand %p2358_p12, %p2352_p9 }
 0x102   : > { %2362 = shalt.err (!%p2359_p4)
}
 0x103   : > { %1936 = dma.hbm_to_vmem [thread:$0]  (!%p2682_p6), %s3211_s8, 16, %s439_s15, [#allocation16]  }
 0x104   : > { %s2363_s3 = scalar_lea.hbm %s3213_s10, 16 }
 0x105   : > { %p2364_p13 = scmp.ne.s32.totalorder %s3213_s10, %s2363_s3  ;;  %p2370_p3 = scmp.lt.u32.totalorder %s2363_s3, %s3213_s10 }
 0x107   : > { %p2366_p0 = pnand %p2364_p13, %p2696_p8 }
 0x109   : > { %p2367_p1 = pneg %p2366_p0 }
 0x10b   : > { %p2372_p2 = pnand %p2370_p3, %p2367_p1 }
 0x10d   : > { %2375 = shalt.err (!%p2372_p2)
}
 0x10e   : > { %s2376_s1 = scalar_lea.vmem %s463_s19, 16  ;;  %s2383_s15 = scalar_lea.vmem %s463_s19, 32 }
 0x10f   : > { %p2377_p5 = scmp.ne.s32.totalorder %s463_s19, %s2376_s1  ;;  %p2384_p10 = scmp.lt.s32.totalorder %s463_s19, %s463_s19 }
 0x110   : > { %p2385_p11 = scmp.lt.s32.totalorder %s2383_s15, %s2376_s1 }
 0x111   : > { %p2379_p7 = pnand %p2377_p5, %p2696_p8 }
 0x112   : > { %p2386_p12 = por %p2385_p11, %p2384_p10 }
 0x113   : > { %p2380_p9 = pneg %p2379_p7 }
 0x115   : > { %p2387_p4 = pnand %p2386_p12, %p2380_p9 }
 0x117   : > { %2390 = shalt.err (!%p2387_p4)
}
 0x118   : > { %1942 = dma.hbm_to_vmem [thread:$0]  (!%p2682_p6), %s3213_s10, 16, %s463_s19, [#allocation19]  }
 0x119   : > { %s2554_s13 = smov [#allocation23]   ;;  %s2391_s23 = scalar_lea.hbm %s3215_s12, 16 }
 0x11a   : > { %s486_s24 = sshll.u32 %s2554_s13, 4  ;;  %p2392_p13 = scmp.ne.s32.totalorder %s3215_s12, %s2391_s23  ;;  %s487_s24 = int_to_ptr.vmem [resolvable:$true] %s486_s24 }
 0x11b   : > { %p2398_p3 = scmp.lt.u32.totalorder %s2391_s23, %s3215_s12 }
 0x11c   : > { %p2394_p0 = pnand %p2392_p13, %p2696_p8 }
 0x11e   : > { %p2395_p1 = pneg %p2394_p0 }
 0x120   : > { %p2400_p2 = pnand %p2398_p3, %p2395_p1 }
 0x122   : > { %2403 = shalt.err (!%p2400_p2)
}
 0x123   : > { %s2404_s19 = scalar_lea.vmem %s487_s24, 16  ;;  %s2411_s17 = scalar_lea.vmem %s487_s24, 32 }
 0x124   : > { %p2405_p5 = scmp.ne.s32.totalorder %s487_s24, %s2404_s19  ;;  %p2412_p10 = scmp.lt.s32.totalorder %s487_s24, %s487_s24 }
 0x125   : > { %p2413_p11 = scmp.lt.s32.totalorder %s2411_s17, %s2404_s19 }
 0x126   : > { %p2407_p7 = pnand %p2405_p5, %p2696_p8 }
 0x127   : > { %p2414_p12 = por %p2413_p11, %p2412_p10 }
 0x128   : > { %p2408_p9 = pneg %p2407_p7 }
 0x12a   : > { %p2415_p4 = pnand %p2414_p12, %p2408_p9 }
 0x12c   : > { %2418 = shalt.err (!%p2415_p4)
}
 0x12d   : > { %s3239_s16 = sld [smem:[#allocation33_spill]]  ;;  %s1664_s20 = sadd.s32 4294967294, %s2539_s28  }
 0x12e   : > { %1948 = dma.hbm_to_vmem [thread:$0]  (!%p2682_p6), %s3215_s12, 16, %s487_s24, [#allocation22]  }
 0x12f   : > { %s2940_s18 = sadd.s32 1, %s2539_s28   ;;  %s42_s13 = sadd.s32 1, %s2535_s27 }
 0x130   : > { %s39_s14 = ssub.s32 %s2539_s28, %s2940_s18  ;;  %p49_p13 = scmp.ne.s32.totalorder %s2535_s27, %s2531_s26 }
 0x131   : > { %p40_p8 = scmp.eq.s32.totalorder %s39_s14, 0  ;;  %p50_p0 = scmp.eq.s32.totalorder %s2539_s28, 0 }
 0x132   : > { %p55_p1 = scmp.ne.s32.totalorder %s2531_s26, %s2527_s25  ;;  %p337_p7 = scmp.eq.s32.totalorder %s1664_s20, 1 }
 0x133   : > { %s2951_s29 = scalar_select %p40_p8, %s2535_s27, %s42_s13  }
 0x134   : > { %p2953_p3 = por %p50_p0, %p49_p13  ;;  %p3241_p2 = scmp.eq.s32.totalorder %s3239_s16, 0 }
 0x135   : > { %p331_p5 = scmp.eq.s32.totalorder %s3239_s16, 1  ;;  %p1969_p9 = scmp.lt.s32.totalorder %s2539_s28, 2 }
 0x136   : > { %p2959_p6 = por %p3241_p2, %p55_p1  ;;  %s497_s23 = sand.u32 1, %s2535_s27  }
 0x137   : > { %p2966_p10 = por %p331_p5, %p49_p13  ;;  %p2970_p11 = por %p337_p7, %p55_p1 }
 0x138   : > { %s1679_s22 = sshll.u32 %s497_s23, 3  ;;  %s1680_s30 = sshll.u32 %s2539_s28, 7 }
 0x139   : > { %s3243_s3 = scalar_select %p2966_p10, 1, 0 }
 0x13a   : > { %s3244_s21 = scalar_select %p2970_p11, 1, 0 }
 0x13b   : > { %s3245_s1 = sld [smem:[#allocation35_spill]]  ;;  %s501_s16 = scalar_lea.vmem [#allocation3], %s1679_s22 }
 0x13c   : > { %s508_s20 = sshll.u32 %s501_s16, 4  ;;  %p2984_p12 = pnand %p1969_p9, %p2953_p3  ;;  %s2980_s20 = int_to_ptr.vmem [resolvable:$true] %s508_s20 }
 0x13d   : > { %s498_s13 = scalar_lea.sflag [#allocation4], %s497_s23 }
 0x13e   : > { %p2421_p8 = pneg %p2984_p12 }
 0x141   : > { %s2978_s15 = scalar_lea.hbm %s3245_s1, %s1680_s30  ;;  %s2424_s19 = scalar_lea.hbm %s3245_s1, 256 }
 0x142   : > { %s2419_s2 = scalar_lea.hbm %s2978_s15, 128  ;;  %p2425_p1 = scmp.lt.u32.totalorder %s2978_s15, %s3245_s1 }
 0x143   : > { %p2420_p4 = scmp.ne.s32.totalorder %s2978_s15, %s2419_s2  ;;  %p2426_p3 = scmp.lt.u32.totalorder %s2424_s19, %s2419_s2 }
 0x144   : > { %p2428_p5 = scmp.lt.u32.totalorder %s2419_s2, %s2978_s15 }
 0x145   : > { %p2422_p13 = pnand %p2421_p8, %p2420_p4  ;;  %p2427_p2 = por %p2426_p3, %p2425_p1 }
 0x147   : > { %p2423_p0 = pneg %p2422_p13  ;;  %p2429_p7 = por %p2428_p5, %p2427_p2 }
 0x149   : > { %p2430_p9 = pnand %p2429_p7, %p2423_p0 }
 0x14b   : > { %2433 = shalt.err (!%p2430_p9)
}
 0x14c   : > { %s2434_s23 = scalar_lea.vmem %s2980_s20, 128  ;;  %s2555_s16 = smov [#allocation3]  }
 0x14d   : > { %p2435_p4 = scmp.ne.s32.totalorder %s2980_s20, %s2434_s23  ;;  %s2439_s22 = sshll.u32 %s2555_s16, 4  ;;  %s2440_s22 = int_to_ptr.vmem [resolvable:$false] %s2439_s22 }
 0x14e   : > { %s2441_s30 = scalar_lea.vmem %s2440_s22, 256  ;;  %p2442_p10 = scmp.lt.s32.totalorder %s2980_s20, %s2440_s22 }
 0x14f   : > { %p2437_p13 = pnand %p2435_p4, %p2421_p8  ;;  %p2443_p1 = scmp.lt.s32.totalorder %s2441_s30, %s2434_s23 }
 0x151   : > { %p2438_p11 = pneg %p2437_p13  ;;  %p2444_p3 = por %p2443_p1, %p2442_p10 }
 0x153   : > { %p2445_p2 = pnand %p2444_p3, %p2438_p11 }
 0x155   : > { %2448 = shalt.err (!%p2445_p2)
}
 0x156   : > { %1952 = dma.hbm_to_vmem [thread:$0]  (!%p2984_p12), %s2978_s15, 128, %s2980_s20, %s498_s13  }
 0x157   : > { %s3247_s2 = sld [smem:[#allocation34_spill]] }
 0x15d   : > { %p3248_p0 = scmp.ne.s32.totalorder %s3247_s2, 0 }
 0x15e   : > { %s3016_s19 = sand.u32 (!%p3248_p0), 1, %s2531_s26  }
 0x15f   : > { %517 = sbr.rel (%p3248_p0) target bundleno = 2974 (0xb9e), region = 72  ;;  %s1682_s0 = sshll.u32 (!%p3248_p0), %s3016_s19, 3 }
 0x160   : > { %s520_s17 = scalar_lea.sflag (!%p3248_p0), [#allocation4], %s3016_s19  ;;  %s523_s23 = scalar_lea.vmem (!%p3248_p0), [#allocation3], %s1682_s0 }
 0x166   : > { %2494 = dma.done.wait (%p2959_p6), %s520_s17, 128  }
 0x167   : > { %2496 = vsyncadd (%p2959_p6), %s520_s17, 4294967168  ;;  %s3249_s15 = sld [smem:[#allocation33_spill]] }
 0x16d   : > { %p3250_p10 = scmp.eq.s32.totalorder %s3249_s15, 0 }
 0x16f   : > { %2498 = dma.done.wait (%p3250_p10), [#allocation7], 32   ;;  %p3251_p11 = pmov %p3250_p10 }
 0x170   : > { %p3252_p12 = pmov %p3250_p10 }
 0x171   : > { %2500 = vsyncadd (%p3251_p11), [#allocation7], 4294967264 }
 0x172   : > { %2502 = dma.done.wait (%p3252_p12), [#allocation10], 272   ;;  %p3253_p8 = pmov %p3250_p10 }
 0x174   : > { %2504 = vsyncadd (%p3253_p8), [#allocation10], 4294967024  ;;  %p3254_p5 = pmov %p3253_p8 }
 0x176   : > { %2506 = dma.done.wait (%p3254_p5), [#allocation13], 272   ;;  %p3255_p7 = pmov %p3254_p5 }
 0x177   : > { %p3256_p6 = pmov %p3254_p5 }
 0x178   : > { %2508 = vsyncadd (%p3255_p7), [#allocation13], 4294967024 }
 0x179   : > { %2510 = dma.done.wait (%p3256_p6), [#allocation16], 32   ;;  %p3257_p9 = pmov %p3254_p5 }
 0x17a   : > { %p3258_p4 = pmov %p3254_p5 }
 0x17b   : > { %2512 = vsyncadd (%p3257_p9), [#allocation16], 4294967264 }
 0x17c   : > { %2514 = dma.done.wait (%p3258_p4), [#allocation19], 272   ;;  %p3259_p13 = pmov %p3258_p4 }
 0x17d   : > { %p3260_p1 = pmov %p3258_p4 }
 0x17e   : > { %2516 = vsyncadd (%p3259_p13), [#allocation19], 4294967024 }
 0x17f   : > { %2518 = dma.done.wait (%p3260_p1), [#allocation22], 1040   ;;  %p3261_p3 = pmov %p3260_p1 }
 0x180   : > { %vm618_vm0 = vcmask 261120   ;;  %v3050_v0 = vld [vmem:[%s523_s23] sm:$0xff]  ;;  %v2045_v7 = vld [vmem:[#allocation9] sm:$0xff]   ;;  %v2556_v8 = vmov 0.0   ;;  %vm2557_vm1 = vmmov 0   ;;  %s2558_s24 = smov 120  }
 0x181   : > { %2520 = vsyncadd (%p3261_p3), [#allocation22], 4294966256  ;;  %v619_v1 = vsel %vm618_vm0, %v3050_v0, 0.0  ;;  %1768 = vmatprep.subr.bf16.mxu0 %v2556_v8  ;;  %1772 = vmatprep.mubr.msk.bf16.mxu0 %vm2557_vm1, %v2556_v8  ;;  %v2046_v9 = vld [vmem:[#allocation9 + $0x8] sm:$0xff]   ;;  %v1696_v14 = vld [vmem:[#allocation6] ss:$0 sm:$0xff] }
 0x182   : > { %620 = vadd.xlane.f32.xlu0 %v619_v1  ;;  %1769 = vmatpush3.bf16.msra.mxu0 %v2045_v7  ;;  %v1697_v16 = vld [vmem:[#allocation8] ss:$0 sm:$0xff]  ;;  %v1698_v20 = vld [vmem:[#allocation11] ss:$0 sm:$0xff]  ;;  %s2559_s20 = smov 96   ;;  %s2560_s14 = smov 88  }
 0x183   : > { %1788 = vmatprep.subr.bf16.mxu1 %v2556_v8  ;;  %1770 = vmatprep.subr.bf16.mxu0 %v2556_v8  ;;  %s2561_s13 = smov 80   ;;  %s2562_s16 = smov 112   ;;  %vm718_vm2 = vcmask 64512   ;;  %vm783_vm3 = vcmask 1043456   ;;  %vm943_vm4 = vcmask 130112   ;;  %vm1060_vm5 = vcmask 195712  }
 0x184   : > { %1790 = vmatprep.mubr.msk.bf16.mxu1 %vm2557_vm1, %v2556_v8  ;;  %s2563_s22 = smov 72   ;;  %s2564_s30 = smov 104   ;;  %vm1177_vm6 = vcmask 261312  }
 0x185   : > { %s2565_s2 = smov 64   ;;  %s2566_s17 = smov 56  }
 0x186   : > { %1771 = vmatpush3.bf16.msra.mxu0 %v2046_v9  ;;  %s2567_s23 = smov 48   ;;  %p3263_p0 = scmp.ne.s32.totalorder %s3243_s3, 0 }
 0x187   : > { %1776 = vmatprep.subr.bf16.mxu0 %v2556_v8 }
 0x20f   : > { %v621_v2 = vpop.xlane.xlu0 %620 }
 0x210   : > { %v623_v3 = vmul.f32 0.03125, %v621_v2 }
 0x212   : > { %v624_v4 = vsub.f32 %v3050_v0, %v623_v3 }
 0x214   : > { %v625_v5 = vmul.f32 %v624_v4, %v624_v4 }
 0x216   : > { %v626_v6 = vsel %vm618_vm0, %v625_v5, 0.0 }
 0x217   : > { %627 = vadd.xlane.f32.xlu0 %v626_v6 }
 0x2a4   : > { %v628_v10 = vpop.xlane.xlu0 %627 }
 0x2a5   : > { %v629_v11 = vmul.f32 0.03125, %v628_v10 }
 0x2a7   : > { %v630_v12 = vadd.f32 1e-05, %v629_v11 }
 0x2a9   : > { %2059 = vrsqrt.f32 %v630_v12 }
 0x2b3   : > { %v2060_v13 = vpop.eup %2059 }
 0x2b4   : > { %v632_v15 = vmul.f32 %v2060_v13, %v624_v4 }
 0x2b6   : > { %v639_v17 = vmul.f32 %v1696_v14, %v632_v15 }
 0x2b8   : > { %v646_v18 = vadd.f32 %v1697_v16, %v639_v17 }
 0x2ba   : > { %v647_v19 = vpack.c.bf16 %v646_v18, %v646_v18 }
 0x2bc   : > { %1773 = vmatmul.mubr.msk.bf16.vlgmr.msra.gmra.mrb[0].mxu0 %vm618_vm0, %v647_v19 }
 0x2bd   : > { %1778 = vmatprep.mubr.msk.bf16.mxu0 %vm2557_vm1, %v2556_v8 }
 0x38f   : > { %v708_v21 = vpop.f32.mrb[0].mxu0 }
 0x390   : > { %v709_v22 = vadd.f32 %v1698_v20, %v708_v21  ;;  %v1774_v23 = vpop.f32.mrb[1].mxu0 }
 0x391   : > { %v711_v24 = vpop.f32.mrb[2].mxu0 }
 0x392   : > { %v3067_v25 = vpack.c.bf16 %v709_v22, %v709_v22  ;;  %v1775_v26 = vpop.f32.mrb[3].mxu0 }
 0x394   : > { %828 = vrot.lane.b32.xlu0 %v3067_v25, %s2558_s24  ;;  %716 = vrot.lane.b32.xlu1 %v3067_v25, %s2559_s20  ;;  %s2568_s24 = smov 40   ;;  %s2569_s20 = smov 8  }
 0x398   : > { %830 = vrot.lane.b32.xlu1 %v3067_v25, %s2560_s14  ;;  %s2570_s14 = smov 16  }
 0x39c   : > { %947 = vrot.lane.b32.xlu1 %v3067_v25, %s2561_s13  ;;  %s2571_s13 = smov 24  }
 0x3a0   : > { %945 = vrot.lane.b32.xlu1 %v3067_v25, %s2562_s16  ;;  %s1731_s16 = sshll.u32 %s3249_s15, 7 }
 0x3a4   : > { %1064 = vrot.lane.b32.xlu1 %v3067_v25, %s2563_s22  ;;  %s613_s22 = scalar_lea.vmem [#allocation24], %s1682_s0  ;;  %s1467_s0 = scalar_lea.sflag [#allocation5], %s3016_s19 }
 0x3a8   : > { %1062 = vrot.lane.b32.xlu1 %v3067_v25, %s2564_s30  ;;  %s1480_s30 = sshll.u32 %s613_s22, 4  ;;  %s3160_s30 = int_to_ptr.vmem [resolvable:$true] %s1480_s30 }
 0x3a9   : > { %s2449_s15 = scalar_lea.vmem %s3160_s30, 128 }
 0x3aa   : > { %p2450_p2 = scmp.ne.s32.totalorder %s3160_s30, %s2449_s15 }
 0x3ac   : > { %p2451_p10 = pnand %p2450_p2, %p3263_p0 }
 0x3ae   : > { %p2452_p11 = pneg %p2451_p10 }
 0x406   : > { %v717_v27 = vpop.permute.xlu1 %716  ;;  %v829_v32 = vpop.permute.xlu0 %828 }
 0x407   : > { %v723_v28 = vsel %vm718_vm2, %v717_v27, 0 }
 0x408   : > { %1777 = vmatpush3.bf16.xpose.msra.mxu0 %v723_v28 }
 0x409   : > { %1782 = vmatprep.subr.bf16.mxu0 %v2556_v8 }
 0x40a   : > { %v831_v29 = vpop.permute.xlu1 %830 }
 0x40b   : > { %v836_v30 = vsel %vm718_vm2, %v831_v29, 0 }
 0x40c   : > { %1789 = vmatpush3.bf16.xpose.msra.mxu1 %v836_v30 }
 0x40d   : > { %1800 = vmatprep.subr.bf16.mxu1 %v2556_v8 }
 0x40e   : > { %v948_v31 = vpop.permute.xlu1 %947 }
 0x40f   : > { %1779 = vmatmul.mubr.msk.bf16.vlgmr.msra.gmra.mrb[4].mxu0 %vm718_vm2, %v3067_v25  ;;  %v953_v34 = vsel %vm718_vm2, %v948_v31, 0 }
 0x410   : > { %1784 = vmatprep.mubr.msk.bf16.mxu0 %vm2557_vm1, %v2556_v8 }
 0x412   : > { %v946_v33 = vpop.permute.xlu1 %945 }
 0x413   : > { %1791 = vmatmul.mubr.msk.bf16.vlgmr.msra.gmra.mrb[0].mxu1 %vm718_vm2, %v829_v32 }
 0x414   : > { %1801 = vmatpush3.bf16.xpose.msra.mxu1 %v953_v34  ;;  %1802 = vmatprep.mubr.msk.bf16.mxu1 %vm2557_vm1, %v2556_v8 }
 0x415   : > { %1812 = vmatprep.subr.bf16.mxu1 %v2556_v8 }
 0x416   : > { %v1065_v35 = vpop.permute.xlu1 %1064 }
 0x417   : > { %v1070_v36 = vsel %vm718_vm2, %v1065_v35, 0 }
 0x41a   : > { %v1063_v37 = vpop.permute.xlu1 %1062 }
 0x41b   : > { %1803 = vmatmul.mubr.msk.bf16.vlgmr.msra.gmra.mrb[4].mxu1 %vm718_vm2, %v946_v33 }
 0x41c   : > { %1813 = vmatpush3.bf16.xpose.msra.mxu1 %v1070_v36  ;;  %1814 = vmatprep.mubr.msk.bf16.mxu1 %vm2557_vm1, %v2556_v8 }
 0x41d   : > { %1824 = vmatprep.subr.bf16.mxu1 %v2556_v8 }
 0x423   : > { %1815 = vmatmul.mubr.msk.bf16.vlgmr.msra.gmra.mrb[8].mxu1 %vm718_vm2, %v1063_v37 }
 0x424   : > { %1828 = vmatprep.mubr.msk.bf16.mxu1 %vm2557_vm1, %v2556_v8 }
 0x4e2   : > { %v759_v38 = vpop.f32.mrb[4].mxu0 }
 0x4e3   : > { %v765_v39 = vmul.f32 0.35355338, %v759_v38  ;;  %v1780_v40 = vpop.f32.mrb[5].mxu0 }
 0x4e4   : > { %v762_v41 = vpop.f32.mrb[6].mxu0 }
 0x4e5   : > { %v1781_v42 = vpop.f32.mrb[7].mxu0  ;;  %v766_v43 = vsel %vm718_vm2, %v765_v39, -inf }
 0x4e6   : > { %v872_v44 = vpop.f32.mrb[0].mxu1  ;;  %767 = vmax.xlane.f32.xlu1 %v766_v43 }
 0x4e7   : > { %v878_v45 = vmul.f32 0.35355338, %v872_v44  ;;  %v1792_v46 = vpop.f32.mrb[1].mxu1 }
 0x4e8   : > { %v875_v47 = vpop.f32.mrb[2].mxu1 }
 0x4e9   : > { %v1793_v48 = vpop.f32.mrb[3].mxu1  ;;  %v879_v49 = vsel %vm718_vm2, %v878_v45, -inf }
 0x4ea   : > { %880 = vmax.xlane.f32.xlu0 %v879_v49 }
 0x4ee   : > { %v989_v50 = vpop.f32.mrb[4].mxu1 }
 0x4ef   : > { %v995_v51 = vmul.f32 0.35355338, %v989_v50  ;;  %v1804_v52 = vpop.f32.mrb[5].mxu1 }
 0x4f0   : > { %v992_v53 = vpop.f32.mrb[6].mxu1  ;;  %v2047_v52 = vld [vmem:[#allocation12] sm:$0xff]  }
 0x4f1   : > { %v1805_v54 = vpop.f32.mrb[7].mxu1  ;;  %v996_v55 = vsel %vm718_vm2, %v995_v51, -inf  ;;  %1825 = vmatpush3.bf16.msra.mxu1 %v2047_v52  ;;  %v2048_v53 = vld [vmem:[#allocation12 + $0x8] sm:$0xff]  }
 0x4f2   : > { %997 = vmax.xlane.f32.xlu1 %v996_v55  ;;  %1826 = vmatprep.subr.bf16.mxu1 %v2556_v8 }
 0x4f5   : > { %1827 = vmatpush3.bf16.msra.mxu1 %v2048_v53 }
 0x4f6   : > { %v1106_v56 = vpop.f32.mrb[8].mxu1  ;;  %1840 = vmatprep.subr.bf16.mxu1 %v2556_v8 }
 0x4f7   : > { %v1112_v57 = vmul.f32 0.35355338, %v1106_v56  ;;  %v1816_v58 = vpop.f32.mrb[9].mxu1 }
 0x4f8   : > { %v1109_v59 = vpop.f32.mrb[10].mxu1 }
 0x4f9   : > { %v1817_v60 = vpop.f32.mrb[11].mxu1  ;;  %v1113_v61 = vsel %vm718_vm2, %v1112_v57, -inf }
 0x4fa   : > { %1114 = vmax.xlane.f32.xlu0 %v1113_v61 }
 0x573   : > { %v768_v62 = vpop.xlane.xlu1 %767 }
 0x574   : > { %v769_v63 = vsub.f32 %v765_v39, %v768_v62 }
 0x576   : > { %v770_v1 = vmul.f32 1.442695, %v769_v63 }
 0x577   : > { %v881_v2 = vpop.xlane.xlu0 %880 }
 0x578   : > { %2061 = vpow2.f32 %v770_v1  ;;  %v882_v3 = vsub.f32 %v878_v45, %v881_v2 }
 0x57a   : > { %v883_v4 = vmul.f32 1.442695, %v882_v3 }
 0x57c   : > { %2063 = vpow2.f32 %v883_v4  ;;  %v1710_v4 = vld [vmem:[#allocation14] ss:$0 sm:$0xff] }
 0x57f   : > { %v998_v15 = vpop.xlane.xlu1 %997 }
 0x580   : > { %v999_v16 = vsub.f32 %v995_v51, %v998_v15 }
 0x582   : > { %v2062_v5 = vpop.eup %2061  ;;  %v1000_v17 = vmul.f32 1.442695, %v999_v16 }
 0x583   : > { %v772_v6 = vsel %vm718_vm2, %v2062_v5, 0.0 }
 0x584   : > { %773 = vadd.xlane.f32.xlu1 %v772_v6 }
 0x586   : > { %v2064_v7 = vpop.eup %2063 }
 0x587   : > { %v1115_v9 = vpop.xlane.xlu0 %1114  ;;  %v885_v10 = vsel %vm718_vm2, %v2064_v7, 0.0 }
 0x588   : > { %v1116_v11 = vsub.f32 %v1112_v57, %v1115_v9  ;;  %886 = vadd.xlane.f32.xlu0 %v885_v10 }
 0x58a   : > { %v1117_v12 = vmul.f32 1.442695, %v1116_v11 }
 0x58c   : > { %2065 = vpow2.f32 %v1117_v12 }
 0x58d   : > { %2067 = vpow2.f32 %v1000_v17 }
 0x595   : > { %778 = vrot.lane.b32.xlu1 %v3067_v25, %s2565_s2 }
 0x596   : > { %v2066_v13 = vpop.eup %2065 }
 0x597   : > { %v1119_v14 = vsel %vm718_vm2, %v2066_v13, 0.0  ;;  %v2068_v18 = vpop.eup %2067 }
 0x598   : > { %1120 = vadd.xlane.f32.xlu0 %v1119_v14  ;;  %v1002_v19 = vsel %vm718_vm2, %v2068_v18, 0.0 }
 0x5ae   : > { %891 = vrot.lane.b32.xlu0 %v3067_v25, %s2566_s17 }
 0x5b9   : > { %1003 = vadd.xlane.f32.xlu1 %v1002_v19  ;;  %v2050_v19 = vld [vmem:[#allocation18 + $0x8] sm:$0xff]  }
 0x5ca   : > { %1008 = vrot.lane.b32.xlu1 %v3067_v25, %s2567_s23  ;;  %s3262_s23 = sld [smem:[#allocation39_spill]] }
 0x5ce   : > { %1125 = vrot.lane.b32.xlu1 %v3067_v25, %s2568_s24 }
 0x5d0   : > { %s3158_s24 = scalar_lea.hbm %s3262_s23, %s1731_s16 }
 0x611   : > { %v774_v20 = vpop.xlane.xlu1 %773 }
 0x612   : > { %2069 = vrcp.f32 %v774_v20 }
 0x615   : > { %v779_v21 = vpop.permute.xlu1 %778  ;;  %v887_v23 = vpop.xlane.xlu0 %886 }
 0x616   : > { %v785_v22 = vsel %vm783_vm3, %v779_v21, 0  ;;  %2071 = vrcp.f32 %v887_v23  ;;  %v1714_v23 = vld [vmem:[#allocation15] ss:$0 sm:$0xff] }
 0x617   : > { %1783 = vmatpush3.bf16.msra.mxu0 %v785_v22 }
 0x618   : > { %1794 = vmatprep.subr.bf16.mxu0 %v2556_v8 }
 0x61c   : > { %v2070_v24 = vpop.eup %2069 }
 0x61d   : > { %v776_v26 = vmul.f32 %v2070_v24, %v2062_v5 }
 0x61f   : > { %v777_v27 = vpack.c.bf16 %v776_v26, %v776_v26  ;;  %v1715_v26 = vld [vmem:[#allocation17] ss:$0 sm:$0xff] }
 0x620   : > { %v2072_v25 = vpop.eup %2071 }
 0x621   : > { %1785 = vmatmul.mubr.msk.bf16.vlgmr.msra.gmra.mrb[8].mxu0 %vm718_vm2, %v777_v27  ;;  %v889_v29 = vmul.f32 %v2072_v25, %v2064_v7 }
 0x622   : > { %1796 = vmatprep.mubr.msk.bf16.mxu0 %vm2557_vm1, %v2556_v8 }
 0x623   : > { %v890_v32 = vpack.c.bf16 %v889_v29, %v889_v29  ;;  %v2051_v29 = vld [vmem:[#allocation21] sm:$0xff]  }
 0x625   : > { %v1121_v28 = vpop.xlane.xlu0 %1120 }
 0x629   : > { %v892_v30 = vpop.permute.xlu0 %891 }
 0x62a   : > { %v897_v31 = vsel %vm783_vm3, %v892_v30, 0  ;;  %v2052_v30 = vld [vmem:[#allocation21 + $0x8] sm:$0xff]  }
 0x62b   : > { %1795 = vmatpush3.bf16.msra.mxu0 %v897_v31  ;;  %v2053_v31 = vld [vmem:[#allocation21 + $0x10] sm:$0xff]  }
 0x62c   : > { %1806 = vmatprep.subr.bf16.mxu0 %v2556_v8 }
 0x62e   : > { %1797 = vmatmul.mubr.msk.bf16.vlgmr.msra.gmra.mrb[12].mxu0 %vm718_vm2, %v890_v32  ;;  %v2054_v32 = vld [vmem:[#allocation21 + $0x18] sm:$0xff]  }
 0x62f   : > { %1808 = vmatprep.mubr.msk.bf16.mxu0 %vm2557_vm1, %v2556_v8 }
 0x646   : > { %v1004_v33 = vpop.xlane.xlu1 %1003 }
 0x647   : > { %2073 = vrcp.f32 %v1004_v33  ;;  %v2055_v33 = vld [vmem:[#allocation21 + $0x20] sm:$0xff]  }
 0x648   : > { %2075 = vrcp.f32 %v1121_v28 }
 0x64a   : > { %v1009_v34 = vpop.permute.xlu1 %1008 }
 0x64b   : > { %v1014_v35 = vsel %vm783_vm3, %v1009_v34, 0  ;;  %v2056_v34 = vld [vmem:[#allocation21 + $0x28] sm:$0xff]  }
 0x64c   : > { %1807 = vmatpush3.bf16.msra.mxu0 %v1014_v35  ;;  %v2057_v35 = vld [vmem:[#allocation21 + $0x30] sm:$0xff]  }
 0x64d   : > { %1818 = vmatprep.subr.bf16.mxu0 %v2556_v8 }
 0x64e   : > { %v1126_v38 = vpop.permute.xlu1 %1125 }
 0x64f   : > { %v1131_v41 = vsel %vm783_vm3, %v1126_v38, 0 }
 0x651   : > { %v2074_v36 = vpop.eup %2073 }
 0x652   : > { %v1006_v37 = vmul.f32 %v2074_v36, %v2068_v18  ;;  %v2076_v40 = vpop.eup %2075  ;;  %v2049_v18 = vld [vmem:[#allocation18] sm:$0xff]   ;;  %v2058_v36 = vld [vmem:[#allocation21 + $0x38] sm:$0xff]  }
 0x653   : > { %v1123_v42 = vmul.f32 %v2076_v40, %v2066_v13 }
 0x654   : > { %v1007_v39 = vpack.c.bf16 %v1006_v37, %v1006_v37  ;;  %v1716_v37 = vld [vmem:[#allocation20] ss:$0 sm:$0xff] }
 0x655   : > { %v1124_v43 = vpack.c.bf16 %v1123_v42, %v1123_v42 }
 0x656   : > { %1809 = vmatmul.mubr.msk.bf16.vlgmr.msra.gmra.mrb[16].mxu0 %vm718_vm2, %v1007_v39 }
 0x657   : > { %1819 = vmatpush3.bf16.msra.mxu0 %v1131_v41  ;;  %1820 = vmatprep.mubr.msk.bf16.mxu0 %vm2557_vm1, %v2556_v8 }
 0x658   : > { %1832 = vmatprep.subr.bf16.mxu0 %v2556_v8 }
 0x65e   : > { %1821 = vmatmul.mubr.msk.bf16.vlgmr.msra.gmra.mrb[20].mxu0 %vm718_vm2, %v1124_v43 }
 0x65f   : > { %1836 = vmatprep.mubr.msk.bf16.mxu0 %vm2557_vm1, %v2556_v8  ;;  %1833 = vmatpush3.bf16.msra.mxu0 %v2049_v18 }
 0x660   : > { %1834 = vmatprep.subr.bf16.mxu0 %v2556_v8 }
 0x663   : > { %1835 = vmatpush3.bf16.msra.mxu0 %v2050_v19 }
 0x6f4   : > { %v821_v44 = vpop.f32.mrb[8].mxu0 }
 0x6f5   : > { %827 = vst.msk [vmem:[#allocation2] sm:$0xff] %vm718_vm2, %v821_v44  ;;  %v1786_v45 = vpop.f32.mrb[9].mxu0 }
 0x6f6   : > { %v824_v46 = vpop.f32.mrb[10].mxu0 }
 0x6f7   : > { %v1787_v47 = vpop.f32.mrb[11].mxu0 }
 0x701   : > { %v933_v48 = vpop.f32.mrb[12].mxu0 }
 0x702   : > { %940 = vrot.lane.b32.xlu0 %v933_v48, %s2569_s20  ;;  %v1798_v49 = vpop.f32.mrb[13].mxu0  ;;  %s2572_s20 = smov [#allocation24]  }
 0x703   : > { %v936_v50 = vpop.f32.mrb[14].mxu0  ;;  %v1721_v49 = vld [vmem:[#allocation23] ss:$0 sm:$0xff] }
 0x704   : > { %v1799_v51 = vpop.f32.mrb[15].mxu0 }
 0x729   : > { %v1050_v54 = vpop.f32.mrb[16].mxu0 }
 0x72a   : > { %1057 = vrot.lane.b32.xlu1 %v1050_v54, %s2570_s14  ;;  %v1810_v55 = vpop.f32.mrb[17].mxu0  ;;  %s2453_s14 = sshll.u32 %s2572_s20, 4  ;;  %s2454_s14 = int_to_ptr.vmem [resolvable:$false] %s2453_s14 }
 0x72b   : > { %v1053_v56 = vpop.f32.mrb[18].mxu0  ;;  %p2456_p12 = scmp.lt.s32.totalorder %s3160_s30, %s2454_s14 }
 0x72c   : > { %v1811_v57 = vpop.f32.mrb[19].mxu0 }
 0x731   : > { %v1167_v58 = vpop.f32.mrb[20].mxu0 }
 0x732   : > { %1174 = vrot.lane.b32.xlu0 %v1167_v58, %s2571_s13  ;;  %v1822_v59 = vpop.f32.mrb[21].mxu0  ;;  %s2455_s13 = scalar_lea.vmem %s2454_s14, 256 }
 0x733   : > { %v1170_v60 = vpop.f32.mrb[22].mxu0  ;;  %p2457_p8 = scmp.lt.s32.totalorder %s2455_s13, %s2449_s15 }
 0x734   : > { %v1823_v61 = vpop.f32.mrb[23].mxu0 }
 0x735   : > { %p2458_p5 = por %p2457_p8, %p2456_p12 }
 0x737   : > { %p2459_p7 = pnand %p2458_p5, %p2452_p11 }
 0x774   : > { %v941_v62 = vpop.permute.xlu0 %940 }
 0x775   : > { %944 = vst.msk [vmem:[#allocation2] sm:$0xff] %vm943_vm4, %v941_v62 }
 0x79c   : > { %v1058_v63 = vpop.permute.xlu1 %1057 }
 0x79d   : > { %1061 = vst.msk [vmem:[#allocation2] sm:$0xff] %vm1060_vm5, %v1058_v63 }
 0x7a4   : > { %v1175_v1 = vpop.permute.xlu0 %1174 }
 0x7a5   : > { %1178 = vst.msk [vmem:[#allocation2] sm:$0xff] %vm1177_vm6, %v1175_v1 }
 0x7ac   : > { %v1179_v2 = vld [vmem:[#allocation2] sm:$0xff] }
 0x7ad   : > { %v1180_v3 = vpack.c.bf16 %v1179_v2, %v1179_v2 }
 0x7af   : > { %1829 = vmatmul.mubr.msk.bf16.vlgmr.msra.gmra.mrb[12].mxu1 %vm618_vm0, %v1180_v3 }
 0x7b0   : > { %1856 = vmatprep.mubr.msk.bf16.mxu1 %vm2557_vm1, %v2556_v8  ;;  %1841 = vmatpush3.bf16.msra.mxu1 %v2051_v29 }
 0x7b1   : > { %1842 = vmatprep.subr.bf16.mxu1 %v2556_v8 }
 0x7b4   : > { %1843 = vmatpush3.bf16.msra.mxu1 %v2052_v30 }
 0x7b5   : > { %1844 = vmatprep.subr.bf16.mxu1 %v2556_v8 }
 0x7b8   : > { %1845 = vmatpush3.bf16.msra.mxu1 %v2053_v31 }
 0x7b9   : > { %1846 = vmatprep.subr.bf16.mxu1 %v2556_v8 }
 0x7bc   : > { %1847 = vmatpush3.bf16.msra.mxu1 %v2054_v32 }
 0x7bd   : > { %1848 = vmatprep.subr.bf16.mxu1 %v2556_v8 }
 0x7c0   : > { %1849 = vmatpush3.bf16.msra.mxu1 %v2055_v33 }
 0x7c1   : > { %1850 = vmatprep.subr.bf16.mxu1 %v2556_v8 }
 0x7c4   : > { %1851 = vmatpush3.bf16.msra.mxu1 %v2056_v34 }
 0x7c5   : > { %1852 = vmatprep.subr.bf16.mxu1 %v2556_v8 }
 0x7c8   : > { %1853 = vmatpush3.bf16.msra.mxu1 %v2057_v35 }
 0x7c9   : > { %1854 = vmatprep.subr.bf16.mxu1 %v2556_v8 }
 0x7cc   : > { %1855 = vmatpush3.bf16.msra.mxu1 %v2058_v36 }
 0x882   : > { %v1241_v5 = vpop.f32.mrb[12].mxu1 }
 0x883   : > { %v1242_v6 = vadd.f32 %v1710_v4, %v1241_v5  ;;  %v1830_v7 = vpop.f32.mrb[13].mxu1 }
 0x884   : > { %v1244_v9 = vpop.f32.mrb[14].mxu1 }
 0x885   : > { %v3136_v10 = vadd.f32 %v1242_v6, %v3050_v0  ;;  %v1831_v11 = vpop.f32.mrb[15].mxu1 }
 0x887   : > { %v1250_v12 = vsel %vm618_vm0, %v3136_v10, 0.0 }
 0x888   : > { %1251 = vadd.xlane.f32.xlu1 %v1250_v12 }
 0x915   : > { %v1252_v13 = vpop.xlane.xlu1 %1251 }
 0x916   : > { %v1253_v14 = vmul.f32 0.03125, %v1252_v13 }
 0x918   : > { %v1254_v15 = vsub.f32 %v3136_v10, %v1253_v14 }
 0x91a   : > { %v1255_v16 = vmul.f32 %v1254_v15, %v1254_v15 }
 0x91c   : > { %v1256_v17 = vsel %vm618_vm0, %v1255_v16, 0.0 }
 0x91d   : > { %1257 = vadd.xlane.f32.xlu0 %v1256_v17 }
 0x9aa   : > { %v1258_v0 = vpop.xlane.xlu0 %1257 }
 0x9ab   : > { %v1259_v20 = vmul.f32 0.03125, %v1258_v0 }
 0x9ad   : > { %v1260_v21 = vadd.f32 1e-05, %v1259_v20 }
 0x9af   : > { %2077 = vrsqrt.f32 %v1260_v21 }
 0x9b9   : > { %v2078_v22 = vpop.eup %2077 }
 0x9ba   : > { %v1262_v24 = vmul.f32 %v2078_v22, %v1254_v15 }
 0x9bc   : > { %v1269_v27 = vmul.f32 %v1714_v23, %v1262_v24 }
 0x9be   : > { %v1276_v25 = vadd.f32 %v1715_v26, %v1269_v27 }
 0x9c0   : > { %v1277_v28 = vpack.c.bf16 %v1276_v25, %v1276_v25 }
 0x9c2   : > { %1837 = vmatmul.mubr.msk.bf16.vlgmr.msra.gmra.mrb[24].mxu0 %vm618_vm0, %v1277_v28 }
 0xa95   : > { %v1338_v38 = vpop.f32.mrb[24].mxu0 }
 0xa96   : > { %v1339_v39 = vadd.f32 %v1716_v37, %v1338_v38  ;;  %v1838_v40 = vpop.f32.mrb[25].mxu0 }
 0xa97   : > { %v1341_v41 = vpop.f32.mrb[26].mxu0 }
 0xa98   : > { %v1720_v42 = vmul.f32 -1.702, %v1339_v39  ;;  %v1839_v43 = vpop.f32.mrb[27].mxu0 }
 0xa9a   : > { %v1346_v44 = vmul.f32 1.442695, %v1720_v42 }
 0xa9c   : > { %2079 = vpow2.f32 %v1346_v44 }
 0xaa6   : > { %v2080_v45 = vpop.eup %2079 }
 0xaa7   : > { %v1348_v46 = vadd.f32 1.0, %v2080_v45 }
 0xaa9   : > { %2081 = vrcp.f32 %v1348_v46 }
 0xab3   : > { %v2082_v47 = vpop.eup %2081 }
 0xab4   : > { %v1351_v48 = vmul.f32 %v2082_v47, %v1339_v39 }
 0xab6   : > { %v1352_v8 = vpack.c.bf16 %v1351_v48, %v1351_v48 }
 0xab8   : > { %1857 = vmatmul.mubr.bf16.vlgmr.msra.gmra.mrb[16].mxu1 %v1352_v8 }
 0xb8b   : > { %v1458_v50 = vpop.f32.mrb[16].mxu1 }
 0xb8c   : > { %v1459_v51 = vadd.f32 %v1721_v49, %v1458_v50  ;;  %v1858_v52 = vpop.f32.mrb[17].mxu1 }
 0xb8d   : > { %v1461_v53 = vpop.f32.mrb[18].mxu1 }
 0xb8e   : > { %v1464_v54 = vadd.f32 %v1459_v51, %v3136_v10  ;;  %v1859_v55 = vpop.f32.mrb[19].mxu1 }
 0xb90   : > { %1465 = vst.msk [vmem:[%s613_s22] sm:$0xff] %vm618_vm0, %v1464_v54 }
 0xb91   : > { %2462 = shalt.err (!%p2459_p7)
}
 0xb92   : > { %s2463_s19 = scalar_lea.hbm %s3158_s24, 128  ;;  %s2467_s2 = scalar_lea.hbm %s3262_s23, 256 }
 0xb93   : > { %p2464_p6 = scmp.ne.s32.totalorder %s3158_s24, %s2463_s19  ;;  %p2468_p13 = scmp.lt.u32.totalorder %s3158_s24, %s3262_s23 }
 0xb94   : > { %p2469_p1 = scmp.lt.u32.totalorder %s2467_s2, %s2463_s19  ;;  %p2471_p2 = scmp.lt.u32.totalorder %s2463_s19, %s3158_s24 }
 0xb95   : > { %p2465_p9 = pnand %p2464_p6, %p3263_p0 }
 0xb96   : > { %p2470_p3 = por %p2469_p1, %p2468_p13 }
 0xb97   : > { %p2466_p4 = pneg %p2465_p9 }
 0xb98   : > { %p2472_p10 = por %p2471_p2, %p2470_p3 }
 0xb9a   : > { %p2473_p11 = pnand %p2472_p10, %p2466_p4 }
 0xb9c   : > { %2476 = shalt.err (!%p2473_p11)
}
 0xb9d   : > { %1910 = dma.vmem_to_hbm [thread:$0]  (%p3263_p0), %s3160_s30, 128, %s3158_s24, %s1467_s0  }
 0xb9e PF: > { %s1492_s15 = sand.u32 1, %s2527_s25   ;;  %p3264_p12 = scmp.ne.s32.totalorder %s3244_s21, 0 }
 0xb9f   : > { %p3265_p8 = scmp.ge.s32.totalorder %s2539_s28, 2  ;;  %s1493_s14 = scalar_lea.sflag [#allocation5], %s1492_s15 }
 0xba1   : > { %p1954_p5 = pnand %p3265_p8, %p3264_p12 }
 0xba3   : > { %2522 = dma.done.wait (!%p1954_p5), %s1493_s14, 128  }
 0xba4   : > { %2524 = vsyncadd (!%p1954_p5), %s1493_s14, 4294967168  ;;  %p32_p7 = scmp.ge.s32.totalorder %s2940_s18, 4   ;;  %s3266_s25 = smov %s2531_s26 }
 0xba5   : > { %s3267_s26 = smov %s2535_s27  ;;  %s3268_s27 = smov %s2951_s29 }
 0xba6   : > { %s3269_s28 = smov %s2940_s18  ;;  %34 = sbr.rel (!%p32_p7) target bundleno = 17 (0x11), region = 165 }
 0xbad   :  { %1498 = vsyncpa [#allocation4], 1 }
 0xbae   :  { %1500 = vsyncpa [#allocation4 + $0x1], 1 }
 0xbaf   :  { %1501 = vsyncpa [#allocation7], 1 }
 0xbb0   :  { %1502 = vsyncpa [#allocation10], 1 }
 0xbb1   :  { %1503 = vsyncpa [#allocation13], 1 }
 0xbb2   :  { %1504 = vsyncpa [#allocation16], 1 }
 0xbb3   :  { %1505 = vsyncpa [#allocation19], 1 }
 0xbb4   :  { %1506 = vsyncpa [#allocation22], 1 }
 0xbb5   :  { %1507 = vsyncpa [#allocation5], 1 }
 0xbb6   :  { %1509 = vsyncpa [#allocation5 + $0x1], 1 }

</bundles_post_ra>
